<compile_context>
chip_gen: v5e
topology: v5e:2x2
jax: 0.10.0
libtpu: 0.0.40
codegen_flags: <defaults>
</compile_context>

<pallas_src>
import functools

import jax
import jax.numpy as jnp
from jax import lax
from jax.experimental import pallas as pl
from jax.experimental.pallas import tpu as pltpu

NEG_INF = -1e30
_VMEM_LIMIT_BYTES = 48 * 1024 * 1024   # explicit scoped limit (safe on v5e/v6e/v7x)
_VMEM_BUDGET_BYTES = 20 * 1024 * 1024  # target working-set used when picking blk


def _supcon_kernel(b_true, has_pad,
                   qf_ref, kf_ref, qlab_ref, klab_ref,   # inputs
                   out_ref,                              # output (per-row mlpp)
                   m_ref, d_ref, sms_ref, sm_ref):       # scratch accumulators
    i = pl.program_id(0)
    k = pl.program_id(1)
    nk = pl.num_programs(1)
    bq = qf_ref.shape[0]
    bk = kf_ref.shape[0]

    @pl.when(k == 0)
    def _init():
        m_ref[...] = jnp.full_like(m_ref, NEG_INF)
        d_ref[...] = jnp.zeros_like(d_ref)
        sms_ref[...] = jnp.zeros_like(sms_ref)
        sm_ref[...] = jnp.zeros_like(sm_ref)

    # sim[q, c] = (xn_q . xn_c) / te  (1/sqrt(te) folded into both normalized operands
    # in the wrapper).  bf16 operands, f32 accumulation; contraction over the lane-major
    # D axis of both operands (no transpose needed).
    sim = lax.dot_general(qf_ref[...], kf_ref[...],
                          dimension_numbers=(((1,), (1,)), ((), ())),
                          preferred_element_type=jnp.float32)          # [bq, bk] f32

    pos_lab = qlab_ref[...] == klab_ref[...]                           # [bq, bk] bool

    # Online max / rescale (shared by both update paths).  Max over ALL columns matches
    # the PyTorch logits_max (taken before masking); padded columns (sim == 0) can never
    # exceed the diagonal similarity 1/te > 0 which the running max has already seen.
    blk_max = jnp.max(sim, axis=1, keepdims=True)
    m_prev = m_ref[...]
    m_new = jnp.maximum(m_prev, blk_max)
    alpha = jnp.exp(m_prev - m_new)
    p = jnp.exp(sim - m_new)
    d_scaled = d_ref[...] * alpha
    m_ref[...] = m_new

    need_mask = i == k                         # diagonal tile: remove self-contrast
    if has_pad:
        need_mask = jnp.logical_or(need_mask, k == nk - 1)   # tile with padded columns

    @pl.when(jnp.logical_not(need_mask))
    def _fast():
        # Interior, fully-valid tile: no iotas, no masks.
        d_ref[...] = d_scaled + jnp.sum(p, axis=1, keepdims=True)
        sms_ref[...] = sms_ref[...] + jnp.sum(
            jnp.where(pos_lab, sim, 0.0), axis=1, keepdims=True)
        sm_ref[...] = sm_ref[...] + jnp.sum(
            pos_lab.astype(jnp.float32), axis=1, keepdims=True)

    @pl.when(need_mask)
    def _masked():
        row_g = i * bq + lax.broadcasted_iota(jnp.int32, (bq, bk), 0)
        col_g = k * bk + lax.broadcasted_iota(jnp.int32, (bq, bk), 1)
        keep = row_g != col_g                               # logits_mask (drop diagonal)
        if has_pad:
            keep = jnp.logical_and(keep, col_g < b_true)    # drop padded columns
        pos = jnp.logical_and(pos_lab, keep)
        d_ref[...] = d_scaled + jnp.sum(jnp.where(keep, p, 0.0), axis=1, keepdims=True)
        sms_ref[...] = sms_ref[...] + jnp.sum(
            jnp.where(pos, sim, 0.0), axis=1, keepdims=True)
        sm_ref[...] = sm_ref[...] + jnp.sum(
            pos.astype(jnp.float32), axis=1, keepdims=True)

    @pl.when(k == nk - 1)
    def _finalize():
        eps = 1e-12
        log_denom = m_ref[...] + jnp.log(d_ref[...])
        inv_cnt = pl.reciprocal(sm_ref[...] + eps, approx=False)
        # sum(mask * log_prob) = sum(mask * sim) - (m + log denom) * sum(mask)
        mlpp = (sms_ref[...] - log_denom * sm_ref[...]) * inv_cnt
        if has_pad:
            rows = i * bq + lax.broadcasted_iota(jnp.int32, (bq, 1), 0)
            mlpp = jnp.where(rows < b_true, mlpp, 0.0)      # zero padded rows
        out_ref[...] = mlpp


def _round_up(x, m):
    return ((x + m - 1) // m) * m


def _est_vmem(blk, d_pad, feat_bytes):
    feat = 2 * 2 * blk * d_pad * feat_bytes     # row + col streams, double-buffered
    temps = 6 * blk * blk * 4                   # sim / p / mask f32 temporaries (estimate)
    scratch = 4 * blk * 128 * 4                 # (blk,1) accumulators, lane-padded
    return feat + temps + scratch


def _pick_block(B, requested, d_pad, feat_bytes):
    blk = max(128, _round_up(requested, 128))
    blk = min(blk, _round_up(B, 128))
    # v7x megacore: prefer >= 2 row blocks (one per TensorCore) without dropping the tile
    # below the 256-wide MXU sweet spot of v6e/v7x.
    if blk > 256 and B <= blk:
        blk = 256
    # Keep the estimated working set within budget (covers v7x's 64 MiB physical VMEM and
    # leaves double-buffering headroom everywhere).
    while blk > 128 and _est_vmem(blk, d_pad, feat_bytes) > _VMEM_BUDGET_BYTES:
        blk -= 128
    return blk


def supcon_loss(te, features, labels, *, block=512, use_bf16=True):
    """SupCon forward, supervised (labels) path. features: [B, D], labels: [B] int."""
    x = features.astype(jnp.float32)
    labels = labels.astype(jnp.int32)
    B, D = x.shape

    D_pad = _round_up(max(D, 128), 128)
    feat_dtype = jnp.bfloat16 if use_bf16 else jnp.float32
    feat_bytes = 2 if use_bf16 else 4
    blk = _pick_block(B, block, D_pad, feat_bytes)
    B_pad = _round_up(B, blk)
    has_pad = B_pad > B

    # Hoisted normalization (done once, f32):
    #   F.normalize(p=2, dim=1, eps=1e-12) == x * rsqrt(max(sum(x^2), 1e-24)),
    # with 1/sqrt(te) folded into both operands so sim = (xn_i . xn_j) / te.
    ssq = jnp.sum(x * x, axis=1, keepdims=True)
    inv_sqrt_te = 1.0 / jnp.sqrt(jnp.asarray(te, jnp.float32))
    xn = x * (lax.rsqrt(jnp.maximum(ssq, 1e-24)) * inv_sqrt_te)

    feat_p = jnp.zeros((B_pad, D_pad), feat_dtype).at[:B, :D].set(xn.astype(feat_dtype))
    lab_col = jnp.full((B_pad, 1), -1, jnp.int32).at[:B, 0].set(labels)   # [B_pad, 1]
    lab_row = lab_col.reshape(1, B_pad)                                    # [1, B_pad]

    n = B_pad // blk
    kernel = functools.partial(_supcon_kernel, B, has_pad)

    mlpp = pl.pallas_call(
        kernel,
        out_shape=jax.ShapeDtypeStruct((B_pad, 1), jnp.float32),
        grid_spec=pltpu.PrefetchScalarGridSpec(
            num_scalar_prefetch=0,
            grid=(n, n),
            in_specs=[
                pl.BlockSpec((blk, D_pad), lambda i, k: (i, 0)),   # row features (anchor)
                pl.BlockSpec((blk, D_pad), lambda i, k: (k, 0)),   # col features (contrast)
                pl.BlockSpec((blk, 1), lambda i, k: (i, 0)),       # row labels (column vec)
                pl.BlockSpec((1, blk), lambda i, k: (0, k)),       # col labels (row vec)
            ],
            out_specs=pl.BlockSpec((blk, 1), lambda i, k: (i, 0)),
            scratch_shapes=[
                pltpu.VMEM((blk, 1), jnp.float32),   # running max m
                pltpu.VMEM((blk, 1), jnp.float32),   # running denominator
                pltpu.VMEM((blk, 1), jnp.float32),   # sum(mask * sim)
                pltpu.VMEM((blk, 1), jnp.float32),   # sum(mask)
            ],
        ),
        compiler_params=pltpu.CompilerParams(
            dimension_semantics=("parallel", "arbitrary"),
            vmem_limit_bytes=_VMEM_LIMIT_BYTES),
    )(feat_p, feat_p, lab_col, lab_row)

    # loss = -(te/te) * mean_i mlpp_i == -sum(mlpp) / B  (padded rows already zeroed).
    return -jnp.sum(mlpp) * (1.0 / B)


def supcon_loss_ref(te, features, labels):
    """Pure-JAX reference mirroring the PyTorch forward (labels path, is_unsup=False)."""
    x = features.astype(jnp.float32)
    xn = x / jnp.maximum(jnp.linalg.norm(x, axis=1, keepdims=True), 1e-12)
    B = x.shape[0]
    sim = (xn @ xn.T) / te
    logits = sim - jnp.max(sim, axis=1, keepdims=True)
    mask = (labels[:, None] == labels[None, :]).astype(jnp.float32)
    logits_mask = 1.0 - jnp.eye(B, dtype=jnp.float32)
    mask = mask * logits_mask
    exp_logits = jnp.exp(logits) * logits_mask
    log_prob = logits - jnp.log(jnp.sum(exp_logits, axis=1, keepdims=True))
    mlpp = jnp.sum(mask * log_prob, axis=1) / (jnp.sum(mask, axis=1) + 1e-12)
    return jnp.mean(-(te / te) * mlpp)


if __name__ == "__main__":
    key = jax.random.PRNGKey(0)
    k1, k2, k3 = jax.random.split(key, 3)
    te = 0.07

    # Small shape consistent with the module's expected input: [bsz, dim] + [bsz] labels.
    B, D = 8, 32
    features = jax.random.normal(k1, (B, D), dtype=jnp.float32)
    labels = jnp.array([0, 1, 0, 1, 2, 2, 3, 3], dtype=jnp.int32)
    ref = supcon_loss_ref(te, features, labels)

    loss_f32 = jax.block_until_ready(supcon_loss(te, features, labels, use_bf16=False))
    assert jnp.allclose(loss_f32, ref, rtol=1e-3, atol=1e-4), (loss_f32, ref)
    loss_bf16 = jax.block_until_ready(supcon_loss(te, features, labels))
    assert jnp.allclose(loss_bf16, ref, rtol=2e-2, atol=2e-3), (loss_bf16, ref)

    # Non-aligned shape that exercises the multi-block grid + fast/masked tile paths
    # (blk auto-picks 256 -> 2x2 grid with padding in the last block).
    B2, D2 = 300, 96
    features2 = jax.random.normal(k2, (B2, D2), dtype=jnp.float32)
    labels2 = jax.random.randint(k3, (B2,), 0, 8, dtype=jnp.int32)
    ref2 = supcon_loss_ref(te, features2, labels2)

    loss2_f32 = jax.block_until_ready(supcon_loss(te, features2, labels2, use_bf16=False))
    assert jnp.allclose(loss2_f32, ref2, rtol=1e-3, atol=1e-4), (loss2_f32, ref2)
    loss2_bf16 = jax.block_until_ready(supcon_loss(te, features2, labels2))
    assert jnp.allclose(loss2_bf16, ref2, rtol=2e-2, atol=2e-3), (loss2_bf16, ref2)

    print("KERNEL_OK")
</pallas_src>

<mosaic_0001>
module attributes {stable_mosaic.version = 11 : i64} {
  func.func @_supcon_kernel(%arg0: i32, %arg1: i32, %arg2: memref<128x128xf32, #tpu.memory_space<vmem>>, %arg3: memref<128x128xf32, #tpu.memory_space<vmem>>, %arg4: memref<128x1xi32, #tpu.memory_space<vmem>>, %arg5: memref<1x128xi32, #tpu.memory_space<vmem>>, %arg6: memref<128x1xf32, #tpu.memory_space<vmem>>, %arg7: memref<128x1xf32, #tpu.memory_space<vmem>>, %arg8: memref<128x1xf32, #tpu.memory_space<vmem>>, %arg9: memref<128x1xf32, #tpu.memory_space<vmem>>, %arg10: memref<128x1xf32, #tpu.memory_space<vmem>>) attributes {dimension_semantics = [#tpu.dimension_semantics<parallel>, #tpu.dimension_semantics<arbitrary>], iteration_bounds = array<i64: 1, 1>, scalar_prefetch = 0 : i64, scratch_operands = 4 : i64, tpu.core_type = #tpu.core_type<tc>, window_params = [{transform_indices = @transform_0, window_bounds = array<i64: 128, 128>}, {transform_indices = @transform_1, window_bounds = array<i64: 128, 128>}, {transform_indices = @transform_2, window_bounds = array<i64: 128, 1>}, {transform_indices = @transform_3, window_bounds = array<i64: 1, 128>}, {transform_indices = @transform_4, window_bounds = array<i64: 128, 1>}]} {
    %c0_i32 = arith.constant 0 : i32
    %0 = arith.cmpi eq, %arg1, %c0_i32 : i32
    %1 = arith.extui %0 : i1 to i32
    %c0_i32_0 = arith.constant 0 : i32
    %2 = arith.cmpi ne, %1, %c0_i32_0 : i32
    scf.if %2 {
      %cst_20 = arith.constant -1.000000e+30 : f32
      %34 = vector.broadcast %cst_20 : f32 to vector<128x1xf32>
      %c0_21 = arith.constant 0 : index
      %c0_22 = arith.constant 0 : index
      %35 = vector.load %arg7[%c0_21, %c0_22] : memref<128x1xf32, #tpu.memory_space<vmem>>, vector<128x1xf32>
      tpu.vector_store %arg7[%c0_21, %c0_22], %34 {strides = array<i32>} : memref<128x1xf32, #tpu.memory_space<vmem>>, vector<128x1xf32>,
      %cst_23 = arith.constant 0.000000e+00 : f32
      %36 = vector.broadcast %cst_23 : f32 to vector<128x1xf32>
      %c0_24 = arith.constant 0 : index
      %c0_25 = arith.constant 0 : index
      %37 = vector.load %arg8[%c0_24, %c0_25] : memref<128x1xf32, #tpu.memory_space<vmem>>, vector<128x1xf32>
      tpu.vector_store %arg8[%c0_24, %c0_25], %36 {strides = array<i32>} : memref<128x1xf32, #tpu.memory_space<vmem>>, vector<128x1xf32>,
      %cst_26 = arith.constant 0.000000e+00 : f32
      %38 = vector.broadcast %cst_26 : f32 to vector<128x1xf32>
      %c0_27 = arith.constant 0 : index
      %c0_28 = arith.constant 0 : index
      %39 = vector.load %arg9[%c0_27, %c0_28] : memref<128x1xf32, #tpu.memory_space<vmem>>, vector<128x1xf32>
      tpu.vector_store %arg9[%c0_27, %c0_28], %38 {strides = array<i32>} : memref<128x1xf32, #tpu.memory_space<vmem>>, vector<128x1xf32>,
      %cst_29 = arith.constant 0.000000e+00 : f32
      %40 = vector.broadcast %cst_29 : f32 to vector<128x1xf32>
      %c0_30 = arith.constant 0 : index
      %c0_31 = arith.constant 0 : index
      %41 = vector.load %arg10[%c0_30, %c0_31] : memref<128x1xf32, #tpu.memory_space<vmem>>, vector<128x1xf32>
      tpu.vector_store %arg10[%c0_30, %c0_31], %40 {strides = array<i32>} : memref<128x1xf32, #tpu.memory_space<vmem>>, vector<128x1xf32>,
    } else {
    }
    %c0 = arith.constant 0 : index
    %c0_1 = arith.constant 0 : index
    %3 = vector.load %arg2[%c0, %c0_1] : memref<128x128xf32, #tpu.memory_space<vmem>>, vector<128x128xf32>
    %c0_2 = arith.constant 0 : index
    %c0_3 = arith.constant 0 : index
    %4 = vector.load %arg3[%c0_2, %c0_3] : memref<128x128xf32, #tpu.memory_space<vmem>>, vector<128x128xf32>
    %cst = arith.constant dense<0.000000e+00> : vector<128x128xf32>
    %5 = tpu.matmul %3, %4, %cst {dimension_numbers = #tpu.dot_dimension_numbers<[1], [1], [0], [0], [0, 0, 1, 0], [], []>} : vector<128x128xf32>, vector<128x128xf32>, vector<128x128xf32> -> vector<128x128xf32>
    %c0_4 = arith.constant 0 : index
    %c0_5 = arith.constant 0 : index
    %6 = vector.load %arg4[%c0_4, %c0_5] : memref<128x1xi32, #tpu.memory_space<vmem>>, vector<128x1xi32>
    %c0_6 = arith.constant 0 : index
    %c0_7 = arith.constant 0 : index
    %7 = vector.load %arg5[%c0_6, %c0_7] : memref<1x128xi32, #tpu.memory_space<vmem>>, vector<1x128xi32>
    %8 = vector.broadcast %6 : vector<128x1xi32> to vector<128x128xi32>
    %9 = vector.broadcast %7 : vector<1x128xi32> to vector<128x128xi32>
    %10 = arith.cmpi eq, %8, %9 : vector<128x128xi32>
    %cst_8 = arith.constant dense<0xFF800000> : vector<128xf32>
    %11 = vector.multi_reduction <maximumf>, %5, %cst_8 [1] : vector<128x128xf32> to vector<128xf32>
    %12 = vector.shape_cast %11 : vector<128xf32> to vector<128x1xf32>
    %c0_9 = arith.constant 0 : index
    %c0_10 = arith.constant 0 : index
    %13 = vector.load %arg7[%c0_9, %c0_10] : memref<128x1xf32, #tpu.memory_space<vmem>>, vector<128x1xf32>
    %14 = arith.maximumf %13, %12 : vector<128x1xf32>
    %15 = arith.subf %13, %14 : vector<128x1xf32>
    %16 = math.exp %15 : vector<128x1xf32>
    %17 = vector.broadcast %14 : vector<128x1xf32> to vector<128x128xf32>
    %18 = arith.subf %5, %17 : vector<128x128xf32>
    %19 = math.exp %18 : vector<128x128xf32>
    %c0_11 = arith.constant 0 : index
    %c0_12 = arith.constant 0 : index
    %20 = vector.load %arg8[%c0_11, %c0_12] : memref<128x1xf32, #tpu.memory_space<vmem>>, vector<128x1xf32>
    %21 = arith.mulf %20, %16 : vector<128x1xf32>
    %c0_13 = arith.constant 0 : index
    %c0_14 = arith.constant 0 : index
    %22 = vector.load %arg7[%c0_13, %c0_14] : memref<128x1xf32, #tpu.memory_space<vmem>>, vector<128x1xf32>
    tpu.vector_store %arg7[%c0_13, %c0_14], %14 {strides = array<i32>} : memref<128x1xf32, #tpu.memory_space<vmem>>, vector<128x1xf32>,
    %23 = arith.cmpi eq, %arg0, %arg1 : i32
    %c0_i32_15 = arith.constant 0 : i32
    %24 = arith.cmpi eq, %arg1, %c0_i32_15 : i32
    %25 = arith.ori %23, %24 : i1
    %true = arith.constant true
    %26 = arith.xori %25, %true : i1
    %27 = arith.extui %26 : i1 to i32
    %c0_i32_16 = arith.constant 0 : i32
    %28 = arith.cmpi ne, %27, %c0_i32_16 : i32
    scf.if %28 {
      %cst_20 = arith.constant dense<0.000000e+00> : vector<128xf32>
      %34 = vector.multi_reduction <add>, %19, %cst_20 [1] : vector<128x128xf32> to vector<128xf32>
      %35 = vector.shape_cast %34 : vector<128xf32> to vector<128x1xf32>
      %36 = arith.addf %21, %35 : vector<128x1xf32>
      %c0_21 = arith.constant 0 : index
      %c0_22 = arith.constant 0 : index
      %37 = vector.load %arg8[%c0_21, %c0_22] : memref<128x1xf32, #tpu.memory_space<vmem>>, vector<128x1xf32>
      tpu.vector_store %arg8[%c0_21, %c0_22], %36 {strides = array<i32>} : memref<128x1xf32, #tpu.memory_space<vmem>>, vector<128x1xf32>,
      %c0_23 = arith.constant 0 : index
      %c0_24 = arith.constant 0 : index
      %38 = vector.load %arg9[%c0_23, %c0_24] : memref<128x1xf32, #tpu.memory_space<vmem>>, vector<128x1xf32>
      %cst_25 = arith.constant 0.000000e+00 : f32
      %39 = vector.broadcast %cst_25 : f32 to vector<128x128xf32>
      %40 = arith.select %10, %5, %39 : vector<128x128xi1>, vector<128x128xf32>
      %cst_26 = arith.constant dense<0.000000e+00> : vector<128xf32>
      %41 = vector.multi_reduction <add>, %40, %cst_26 [1] : vector<128x128xf32> to vector<128xf32>
      %42 = vector.shape_cast %41 : vector<128xf32> to vector<128x1xf32>
      %43 = arith.addf %38, %42 : vector<128x1xf32>
      %c0_27 = arith.constant 0 : index
      %c0_28 = arith.constant 0 : index
      %44 = vector.load %arg9[%c0_27, %c0_28] : memref<128x1xf32, #tpu.memory_space<vmem>>, vector<128x1xf32>
      tpu.vector_store %arg9[%c0_27, %c0_28], %43 {strides = array<i32>} : memref<128x1xf32, #tpu.memory_space<vmem>>, vector<128x1xf32>,
      %c0_29 = arith.constant 0 : index
      %c0_30 = arith.constant 0 : index
      %45 = vector.load %arg10[%c0_29, %c0_30] : memref<128x1xf32, #tpu.memory_space<vmem>>, vector<128x1xf32>
      %46 = arith.extui %10 : vector<128x128xi1> to vector<128x128xi32>
      %47 = arith.sitofp %46 : vector<128x128xi32> to vector<128x128xf32>
      %cst_31 = arith.constant dense<0.000000e+00> : vector<128xf32>
      %48 = vector.multi_reduction <add>, %47, %cst_31 [1] : vector<128x128xf32> to vector<128xf32>
      %49 = vector.shape_cast %48 : vector<128xf32> to vector<128x1xf32>
      %50 = arith.addf %45, %49 : vector<128x1xf32>
      %c0_32 = arith.constant 0 : index
      %c0_33 = arith.constant 0 : index
      %51 = vector.load %arg10[%c0_32, %c0_33] : memref<128x1xf32, #tpu.memory_space<vmem>>, vector<128x1xf32>
      tpu.vector_store %arg10[%c0_32, %c0_33], %50 {strides = array<i32>} : memref<128x1xf32, #tpu.memory_space<vmem>>, vector<128x1xf32>,
    } else {
    }
    %29 = arith.extui %25 : i1 to i32
    %c0_i32_17 = arith.constant 0 : i32
    %30 = arith.cmpi ne, %29, %c0_i32_17 : i32
    scf.if %30 {
      %c128_i32 = arith.constant 128 : i32
      %34 = arith.muli %arg0, %c128_i32 : i32
      %35 = tpu.iota {dimensions = array<i32: 0>} : vector<128x128xi32>
      %36 = vector.broadcast %34 : i32 to vector<128x128xi32>
      %37 = arith.addi %36, %35 : vector<128x128xi32>
      %c128_i32_20 = arith.constant 128 : i32
      %38 = arith.muli %arg1, %c128_i32_20 : i32
      %39 = tpu.iota {dimensions = array<i32: 1>} : vector<128x128xi32>
      %40 = vector.broadcast %38 : i32 to vector<128x128xi32>
      %41 = arith.addi %40, %39 : vector<128x128xi32>
      %42 = arith.cmpi ne, %37, %41 : vector<128x128xi32>
      %c8_i32 = arith.constant 8 : i32
      %43 = vector.broadcast %c8_i32 : i32 to vector<128x128xi32>
      %44 = arith.cmpi slt, %41, %43 : vector<128x128xi32>
      %45 = arith.andi %42, %44 : vector<128x128xi1>
      %46 = arith.andi %10, %45 : vector<128x128xi1>
      %cst_21 = arith.constant 0.000000e+00 : f32
      %47 = vector.broadcast %cst_21 : f32 to vector<128x128xf32>
      %48 = arith.select %45, %19, %47 : vector<128x128xi1>, vector<128x128xf32>
      %cst_22 = arith.constant dense<0.000000e+00> : vector<128xf32>
      %49 = vector.multi_reduction <add>, %48, %cst_22 [1] : vector<128x128xf32> to vector<128xf32>
      %50 = vector.shape_cast %49 : vector<128xf32> to vector<128x1xf32>
      %51 = arith.addf %21, %50 : vector<128x1xf32>
      %c0_23 = arith.constant 0 : index
      %c0_24 = arith.constant 0 : index
      %52 = vector.load %arg8[%c0_23, %c0_24] : memref<128x1xf32, #tpu.memory_space<vmem>>, vector<128x1xf32>
      tpu.vector_store %arg8[%c0_23, %c0_24], %51 {strides = array<i32>} : memref<128x1xf32, #tpu.memory_space<vmem>>, vector<128x1xf32>,
      %c0_25 = arith.constant 0 : index
      %c0_26 = arith.constant 0 : index
      %53 = vector.load %arg9[%c0_25, %c0_26] : memref<128x1xf32, #tpu.memory_space<vmem>>, vector<128x1xf32>
      %cst_27 = arith.constant 0.000000e+00 : f32
      %54 = vector.broadcast %cst_27 : f32 to vector<128x128xf32>
      %55 = arith.select %46, %5, %54 : vector<128x128xi1>, vector<128x128xf32>
      %cst_28 = arith.constant dense<0.000000e+00> : vector<128xf32>
      %56 = vector.multi_reduction <add>, %55, %cst_28 [1] : vector<128x128xf32> to vector<128xf32>
      %57 = vector.shape_cast %56 : vector<128xf32> to vector<128x1xf32>
      %58 = arith.addf %53, %57 : vector<128x1xf32>
      %c0_29 = arith.constant 0 : index
      %c0_30 = arith.constant 0 : index
      %59 = vector.load %arg9[%c0_29, %c0_30] : memref<128x1xf32, #tpu.memory_space<vmem>>, vector<128x1xf32>
      tpu.vector_store %arg9[%c0_29, %c0_30], %58 {strides = array<i32>} : memref<128x1xf32, #tpu.memory_space<vmem>>, vector<128x1xf32>,
      %c0_31 = arith.constant 0 : index
      %c0_32 = arith.constant 0 : index
      %60 = vector.load %arg10[%c0_31, %c0_32] : memref<128x1xf32, #tpu.memory_space<vmem>>, vector<128x1xf32>
      %61 = arith.extui %46 : vector<128x128xi1> to vector<128x128xi32>
      %62 = arith.sitofp %61 : vector<128x128xi32> to vector<128x128xf32>
      %cst_33 = arith.constant dense<0.000000e+00> : vector<128xf32>
      %63 = vector.multi_reduction <add>, %62, %cst_33 [1] : vector<128x128xf32> to vector<128xf32>
      %64 = vector.shape_cast %63 : vector<128xf32> to vector<128x1xf32>
      %65 = arith.addf %60, %64 : vector<128x1xf32>
      %c0_34 = arith.constant 0 : index
      %c0_35 = arith.constant 0 : index
      %66 = vector.load %arg10[%c0_34, %c0_35] : memref<128x1xf32, #tpu.memory_space<vmem>>, vector<128x1xf32>
      tpu.vector_store %arg10[%c0_34, %c0_35], %65 {strides = array<i32>} : memref<128x1xf32, #tpu.memory_space<vmem>>, vector<128x1xf32>,
    } else {
    }
    %c0_i32_18 = arith.constant 0 : i32
    %31 = arith.cmpi eq, %arg1, %c0_i32_18 : i32
    %32 = arith.extui %31 : i1 to i32
    %c0_i32_19 = arith.constant 0 : i32
    %33 = arith.cmpi ne, %32, %c0_i32_19 : i32
    scf.if %33 {
      %c0_20 = arith.constant 0 : index
      %c0_21 = arith.constant 0 : index
      %34 = vector.load %arg7[%c0_20, %c0_21] : memref<128x1xf32, #tpu.memory_space<vmem>>, vector<128x1xf32>
      %c0_22 = arith.constant 0 : index
      %c0_23 = arith.constant 0 : index
      %35 = vector.load %arg8[%c0_22, %c0_23] : memref<128x1xf32, #tpu.memory_space<vmem>>, vector<128x1xf32>
      %36 = math.log %35 : vector<128x1xf32>
      %37 = arith.addf %34, %36 : vector<128x1xf32>
      %c0_24 = arith.constant 0 : index
      %c0_25 = arith.constant 0 : index
      %38 = vector.load %arg10[%c0_24, %c0_25] : memref<128x1xf32, #tpu.memory_space<vmem>>, vector<128x1xf32>
      %cst_26 = arith.constant 9.99999996E-13 : f32
      %39 = vector.broadcast %cst_26 : f32 to vector<128x1xf32>
      %40 = arith.addf %38, %39 : vector<128x1xf32>
      %41 = tpu.reciprocal %40 : vector<128x1xf32> -> vector<128x1xf32>
      %c0_27 = arith.constant 0 : index
      %c0_28 = arith.constant 0 : index
      %42 = vector.load %arg9[%c0_27, %c0_28] : memref<128x1xf32, #tpu.memory_space<vmem>>, vector<128x1xf32>
      %c0_29 = arith.constant 0 : index
      %c0_30 = arith.constant 0 : index
      %43 = vector.load %arg10[%c0_29, %c0_30] : memref<128x1xf32, #tpu.memory_space<vmem>>, vector<128x1xf32>
      %44 = arith.mulf %37, %43 : vector<128x1xf32>
      %45 = arith.subf %42, %44 : vector<128x1xf32>
      %46 = arith.mulf %45, %41 : vector<128x1xf32>
      %c128_i32 = arith.constant 128 : i32
      %47 = arith.muli %arg0, %c128_i32 : i32
      %48 = tpu.iota {dimensions = array<i32: 0>} : vector<128x1xi32>
      %49 = vector.broadcast %47 : i32 to vector<128x1xi32>
      %50 = arith.addi %49, %48 : vector<128x1xi32>
      %c8_i32 = arith.constant 8 : i32
      %51 = vector.broadcast %c8_i32 : i32 to vector<128x1xi32>
      %52 = arith.cmpi slt, %50, %51 : vector<128x1xi32>
      %cst_31 = arith.constant 0.000000e+00 : f32
      %53 = vector.broadcast %cst_31 : f32 to vector<128x1xf32>
      %54 = arith.select %52, %46, %53 : vector<128x1xi1>, vector<128x1xf32>
      %c0_32 = arith.constant 0 : index
      %c0_33 = arith.constant 0 : index
      %55 = vector.load %arg6[%c0_32, %c0_33] : memref<128x1xf32, #tpu.memory_space<vmem>>, vector<128x1xf32>
      tpu.vector_store %arg6[%c0_32, %c0_33], %54 {strides = array<i32>} : memref<128x1xf32, #tpu.memory_space<vmem>>, vector<128x1xf32>,
    } else {
    }
    return
  }
  func.func @transform_0(%arg0: i32, %arg1: i32) -> (i32, i32) {
    %c0_i32 = arith.constant 0 : i32
    %c0_i32_0 = arith.constant 0 : i32
    return %arg0, %c0_i32 : i32, i32
  }
  func.func @transform_1(%arg0: i32, %arg1: i32) -> (i32, i32) {
    %c0_i32 = arith.constant 0 : i32
    %c0_i32_0 = arith.constant 0 : i32
    return %arg1, %c0_i32 : i32, i32
  }
  func.func @transform_2(%arg0: i32, %arg1: i32) -> (i32, i32) {
    %c0_i32 = arith.constant 0 : i32
    %c0_i32_0 = arith.constant 0 : i32
    return %arg0, %c0_i32 : i32, i32
  }
  func.func @transform_3(%arg0: i32, %arg1: i32) -> (i32, i32) {
    %c0_i32 = arith.constant 0 : i32
    %c0_i32_0 = arith.constant 0 : i32
    return %c0_i32, %arg1 : i32, i32
  }
  func.func @transform_4(%arg0: i32, %arg1: i32) -> (i32, i32) {
    %c0_i32 = arith.constant 0 : i32
    %c0_i32_0 = arith.constant 0 : i32
    return %arg0, %c0_i32 : i32, i32
  }
}

</mosaic_0001>

<bundles_post_ra>
// kernel: tpu_custom_call.1
= control target key start
LH: loop header
LB: loop body
LE: loop exit
PB: predicated region body
PF: predicated region fallthrough
CT: control target
= control target key end

     0   :  { %9 = vsyncpa [#allocation7], 0  ;;  %s1902_s18 = smov [#allocation6]   ;;  %s1903_s20 = smov 128   ;;  %s2948_s0 = inlined_call_operand.vmem [shape: f32[128,128], index: 0, kind: input, shape index: {}]   ;;  %s2949_s1 = inlined_call_operand.hbm [shape: f32[128,128], index: 1, kind: input, shape index: {}]   ;;  %s2950_s2 = inlined_call_operand.vmem [shape: s32[128,1], index: 2, kind: input, shape index: {}]   ;;  %s2951_s3 = inlined_call_operand.vmem [shape: s32[1,128], index: 3, kind: input, shape index: {}]   ;;  %s2952_s4 = inlined_call_operand.vmem [shape: f32[128,1], index: 4, kind: output, shape index: {}]  }
   0x1   :  { %s16_s17 = sshll.u32 %s2949_s1, 4  ;;  %s18_s19 = sshll.u32 %s1902_s18, 4  ;;  %s17_s17 = int_to_ptr.hbm [resolvable:$true] %s16_s17  ;;  %s19_s19 = int_to_ptr.vmem [resolvable:$true] %s18_s19 }
   0x2   :  { %s1904_s21 = smov 8  }
   0x3   :  { %24 = dma.hbm_to_vmem [thread:$0]  %s17_s17, 2048, %s19_s19, [#allocation7], %s1903_s20, %s1903_s20, %s1904_s21  }
   0x4   :  { %1900 = dma.done.wait [#allocation7], 2048  }
   0x5   :  { %1901 = vsyncadd [#allocation7], 4294965248  ;;  %vm2953_vm0 = vcmask 7168   ;;  %v2972_v0 = vmov 0.0   ;;  %v1906_v1 = vmov 0   ;;  %v199_v2 = vld [vmem:[%s2950_s2] sm:$0xff]  ;;  %v576_v50 = vlaneseq }
   0x6   :  { %1698 = vst.msk [vmem:[%s2952_s4 + $0x8] sm:$0xff] %vm2953_vm0, %v2972_v0  ;;  %1804 = vset.pattern.permute.xlu0 %v1906_v1  ;;  %1805 = vset.pattern.permute.xlu1 %v1906_v1  ;;  %v133_v3 = vld [vmem:[#allocation6 + $0x78] sm:$0xff]  ;;  %v201_v4 = vld [vmem:[%s2950_s2 + $0x10] sm:$0xff]  ;;  %v200_v6 = vld [vmem:[%s2950_s2 + $0x8] sm:$0xff]  ;;  %v2990_v56 = vmov 0 }
   0x7   :  { %1699 = vst.msk [vmem:[%s2952_s4 + $0x10] sm:$0xff] %vm2953_vm0, %v2972_v0  ;;  %1806 = vset.pattern.permute.xlu2 %v1906_v1  ;;  %217 = vperm.xlu0 %1804, %v199_v2   ;;  %v132_v5 = vld [vmem:[#allocation6 + $0x70] sm:$0xff]  ;;  %v131_v7 = vld [vmem:[#allocation6 + $0x68] sm:$0xff]  ;;  %v202_v8 = vld [vmem:[%s2950_s2 + $0x18] sm:$0xff]  ;;  %v2203_v51 = vshrl.u32 %v576_v50, 7  ;;  %v2205_v52 = vand.u32 127, %v576_v50 }
   0x8   :  { %1700 = vst.msk [vmem:[%s2952_s4 + $0x18] sm:$0xff] %vm2953_vm0, %v2972_v0  ;;  %134 = vmatpush.xpose.msra.mxu0 %v133_v3  ;;  %1750 = vmatpush.xpose.msra.mxu1 %v133_v3  ;;  %v130_v9 = vld [vmem:[#allocation6 + $0x60] sm:$0xff]  ;;  %v205_v10 = vld [vmem:[%s2950_s2 + $0x30] sm:$0xff]  ;;  %v129_v11 = vld [vmem:[#allocation6 + $0x58] sm:$0xff]  ;;  %v2994_v1 = vmov 0 }
   0x9   :  { %1701 = vst.msk [vmem:[%s2952_s4 + $0x20] sm:$0xff] %vm2953_vm0, %v2972_v0  ;;  %1751 = vmatpush.xpose.msra.mxu2 %v133_v3  ;;  %1752 = vmatpush.xpose.msra.mxu3 %v133_v3  ;;  %v203_v12 = vld [vmem:[%s2950_s2 + $0x20] sm:$0xff]  ;;  %v206_v13 = vld [vmem:[%s2950_s2 + $0x38] sm:$0xff]  ;;  %v128_v14 = vld [vmem:[#allocation6 + $0x50] sm:$0xff]  ;;  %vm615_vm1 = vcmp.ne.s32.totalorder %v2203_v51, %v2205_v52  ;;  %v579_v54 = vadd.s32 16, %v2203_v51  ;;  %vm2954_vm2 = vcmp.lt.s32.totalorder %v2205_v52, 8 }
   0xa   :  { %1702 = vst.msk [vmem:[%s2952_s4 + $0x28] sm:$0xff] %vm2953_vm0, %v2972_v0  ;;  %223 = vperm.xlu1 %1805, %v201_v4   ;;  %229 = vperm.xlu2 %1806, %v203_v12   ;;  %v208_v15 = vld [vmem:[%s2950_s2 + $0x48] sm:$0xff]  ;;  %v209_v18 = vld [vmem:[%s2950_s2 + $0x50] sm:$0xff]  ;;  %v126_v19 = vld [vmem:[#allocation6 + $0x40] sm:$0xff]  ;;  %v578_v58 = vadd.s32 8, %v2203_v51  ;;  %v580_v59 = vadd.s32 24, %v2203_v51 }
   0xb   :  { %1703 = vst.msk [vmem:[%s2952_s4 + $0x30] sm:$0xff] %vm2953_vm0, %v2972_v0  ;;  %v127_v16 = vld [vmem:[#allocation6 + $0x48] sm:$0xff]  ;;  %v211_v20 = vld [vmem:[%s2950_s2 + $0x60] sm:$0xff]  ;;  %v125_v21 = vld [vmem:[#allocation6 + $0x38] sm:$0xff]  ;;  %vm617_vm4 = vcmp.ne.s32.totalorder %v579_v54, %v2205_v52  ;;  %v581_v62 = vadd.s32 32, %v2203_v51  ;;  %v582_v3 = vadd.s32 40, %v2203_v51 }
   0xc   :  { %1704 = vst.msk [vmem:[%s2952_s4 + $0x38] sm:$0xff] %vm2953_vm0, %v2972_v0  ;;  %135 = vmatpush.xpose.msra.mxu0 %v132_v5  ;;  %1753 = vmatpush.xpose.msra.mxu1 %v132_v5  ;;  %v204_v17 = vld [vmem:[%s2950_s2 + $0x28] sm:$0xff]  ;;  %v207_v22 = vld [vmem:[%s2950_s2 + $0x40] sm:$0xff]  ;;  %v124_v24 = vld [vmem:[#allocation6 + $0x30] sm:$0xff]  ;;  %vm616_vm9 = vcmp.ne.s32.totalorder %v578_v58, %v2205_v52  ;;  %vm618_vm10 = vcmp.ne.s32.totalorder %v580_v59, %v2205_v52  ;;  %v2996_v4 = vmov 0  ;;  %v585_v12 = vadd.s32 64, %v2203_v51 }
   0xd   :  { %1705 = vst.msk [vmem:[%s2952_s4 + $0x40] sm:$0xff] %vm2953_vm0, %v2972_v0  ;;  %1754 = vmatpush.xpose.msra.mxu2 %v132_v5  ;;  %1755 = vmatpush.xpose.msra.mxu3 %v132_v5  ;;  %v212_v23 = vld [vmem:[%s2950_s2 + $0x68] sm:$0xff]  ;;  %v210_v25 = vld [vmem:[%s2950_s2 + $0x58] sm:$0xff]  ;;  %v122_v28 = vld [vmem:[#allocation6 + $0x20] sm:$0xff]  ;;  %vm619_vm12 = vcmp.ne.s32.totalorder %v581_v62, %v2205_v52  ;;  %v2998_v5 = vmov 0  ;;  %vm620_vm15 = vcmp.ne.s32.totalorder %v582_v3, %v2205_v52 }
   0xe   :  { %1706 = vst.msk [vmem:[%s2952_s4 + $0x48] sm:$0xff] %vm2953_vm0, %v2972_v0  ;;  %v214_v26 = vld [vmem:[%s2950_s2 + $0x78] sm:$0xff]  ;;  %v123_v27 = vld [vmem:[#allocation6 + $0x28] sm:$0xff]  ;;  %v213_v29 = vld [vmem:[%s2950_s2 + $0x70] sm:$0xff] }
   0xf   :  { %1707 = vst.msk [vmem:[%s2952_s4 + $0x50] sm:$0xff] %vm2953_vm0, %v2972_v0  ;;  %220 = vperm.xlu0 %1804, %v200_v6   ;;  %v121_v30 = vld [vmem:[#allocation6 + $0x18] sm:$0xff]  ;;  %v120_v31 = vld [vmem:[#allocation6 + $0x10] sm:$0xff]  ;;  %v119_v32 = vld [vmem:[#allocation6 + $0x8] sm:$0xff] }
  0x10   :  { %1708 = vst.msk [vmem:[%s2952_s4 + $0x58] sm:$0xff] %vm2953_vm0, %v2972_v0  ;;  %136 = vmatpush.xpose.msra.mxu0 %v131_v7  ;;  %1756 = vmatpush.xpose.msra.mxu1 %v131_v7  ;;  %v118_v33 = vld [vmem:[#allocation6] sm:$0xff]  ;;  %v103_v38 = vld [vmem:[%s2948_s0 + $0x8] sm:$0xff]  ;;  %v104_v42 = vld [vmem:[%s2948_s0 + $0x10] sm:$0xff] }
  0x11   :  { %1709 = vst.msk [vmem:[%s2952_s4 + $0x60] sm:$0xff] %vm2953_vm0, %v2972_v0  ;;  %1757 = vmatpush.xpose.msra.mxu2 %v131_v7  ;;  %1758 = vmatpush.xpose.msra.mxu3 %v131_v7  ;;  %v102_v34 = vld [vmem:[%s2948_s0] sm:$0xff]  ;;  %v107_v39 = vld [vmem:[%s2948_s0 + $0x28] sm:$0xff]  ;;  %v108_v43 = vld [vmem:[%s2948_s0 + $0x30] sm:$0xff]  ;;  %v3000_v7 = vmov 0 }
  0x12   :  { %1710 = vst.msk [vmem:[%s2952_s4 + $0x68] sm:$0xff] %vm2953_vm0, %v2972_v0  ;;  %226 = vperm.xlu1 %1805, %v202_v8   ;;  %232 = vperm.xlu2 %1806, %v204_v17   ;;  %v106_v35 = vld [vmem:[%s2948_s0 + $0x20] sm:$0xff]  ;;  %v111_v40 = vld [vmem:[%s2948_s0 + $0x48] sm:$0xff]  ;;  %v112_v44 = vld [vmem:[%s2948_s0 + $0x50] sm:$0xff]  ;;  %v583_v8 = vadd.s32 48, %v2203_v51  ;;  %v3006_v17 = vmov 0 }
  0x13   :  { %1711 = vst.msk [vmem:[%s2952_s4 + $0x70] sm:$0xff] %vm2953_vm0, %v2972_v0  ;;  %v110_v36 = vld [vmem:[%s2948_s0 + $0x40] sm:$0xff]  ;;  %v115_v41 = vld [vmem:[%s2948_s0 + $0x68] sm:$0xff]  ;;  %v116_v45 = vld [vmem:[%s2948_s0 + $0x70] sm:$0xff] }
  0x14   :  { %1712 = vst.msk [vmem:[%s2952_s4 + $0x78] sm:$0xff] %vm2953_vm0, %v2972_v0  ;;  %137 = vmatpush.xpose.msra.mxu0 %v130_v9  ;;  %1759 = vmatpush.xpose.msra.mxu1 %v130_v9  ;;  %v114_v37 = vld [vmem:[%s2948_s0 + $0x60] sm:$0xff]  ;;  %v105_v46 = vld [vmem:[%s2948_s0 + $0x18] sm:$0xff]  ;;  %vm2218_vm3 = vmand %vm615_vm1, %vm2954_vm2 }
  0x15   :  { %54 = vst.msk [vmem:[#allocation3] sm:$0xff] %vm2953_vm0, %v2972_v0  ;;  %1760 = vmatpush.xpose.msra.mxu2 %v130_v9  ;;  %1761 = vmatpush.xpose.msra.mxu3 %v130_v9  ;;  %v109_v47 = vld [vmem:[%s2948_s0 + $0x38] sm:$0xff]  ;;  %v2214_v55 = vld [vmem:[%s2951_s3] ss:$0 sm:$0xff]  ;;  %v2991_v56 = vsel %vm2218_vm3, 4294967295, %v2990_v56  ;;  %vm2239_vm8 = vmand %vm617_vm4, %vm2954_vm2  ;;  %v592_v9 = vadd.s32 120, %v2203_v51 }
  0x16   :  { %55 = vst.msk [vmem:[#allocation3 + $0x8] sm:$0xff] %vm2953_vm0, %v2972_v0  ;;  %v113_v48 = vld [vmem:[%s2948_s0 + $0x58] sm:$0xff]  ;;  %v2995_v1 = vsel %vm2239_vm8, 4294967295, %v2994_v1  ;;  %vm2255_vm13 = vmand %vm616_vm9, %vm2954_vm2  ;;  %vm621_vm9 = vcmp.ne.s32.totalorder %v583_v8, %v2205_v52 }
  0x17   :  { %56 = vst.msk [vmem:[#allocation3 + $0x10] sm:$0xff] %vm2953_vm0, %v2972_v0  ;;  %235 = vperm.xlu0 %1804, %v205_v10   ;;  %v117_v49 = vld [vmem:[%s2948_s0 + $0x78] sm:$0xff]  ;;  %v2999_v5 = vsel %vm2255_vm13, 4294967295, %v2998_v5  ;;  %vm2261_vm14 = vmand %vm618_vm10, %vm2954_vm2 }
  0x18   :  { %57 = vst.msk [vmem:[#allocation3 + $0x18] sm:$0xff] %vm2953_vm0, %v2972_v0  ;;  %138 = vmatpush.xpose.msra.mxu0 %v129_v11  ;;  %1762 = vmatpush.xpose.msra.mxu1 %v129_v11  ;;  %v3001_v7 = vsel %vm2261_vm14, 4294967295, %v3000_v7  ;;  %vm2274_vm4 = vmand %vm619_vm12, %vm2954_vm2 }
  0x19   :  { %58 = vst.msk [vmem:[#allocation3 + $0x20] sm:$0xff] %vm2953_vm0, %v2972_v0  ;;  %1763 = vmatpush.xpose.msra.mxu2 %v129_v11  ;;  %1764 = vmatpush.xpose.msra.mxu3 %v129_v11  ;;  %v3002_v11 = vmov 0 }
  0x1a   :  { %59 = vst.msk [vmem:[#allocation3 + $0x28] sm:$0xff] %vm2953_vm0, %v2972_v0  ;;  %238 = vperm.xlu1 %1805, %v206_v13   ;;  %241 = vperm.xlu2 %1806, %v207_v22   ;;  %v3003_v11 = vsel %vm2274_vm4, 4294967295, %v3002_v11 }
  0x1b   :  { %60 = vst.msk [vmem:[#allocation3 + $0x30] sm:$0xff] %vm2953_vm0, %v2972_v0 }
  0x1c   :  { %61 = vst.msk [vmem:[#allocation3 + $0x38] sm:$0xff] %vm2953_vm0, %v2972_v0  ;;  %139 = vmatpush.xpose.msra.mxu0 %v128_v14  ;;  %1765 = vmatpush.xpose.msra.mxu1 %v128_v14 }
  0x1d   :  { %62 = vst.msk [vmem:[#allocation3 + $0x40] sm:$0xff] %vm2953_vm0, %v2972_v0  ;;  %1766 = vmatpush.xpose.msra.mxu2 %v128_v14  ;;  %1767 = vmatpush.xpose.msra.mxu3 %v128_v14  ;;  %v3004_v14 = vmov 0 }
  0x1e   :  { %63 = vst.msk [vmem:[#allocation3 + $0x48] sm:$0xff] %vm2953_vm0, %v2972_v0 }
  0x1f   :  { %64 = vst.msk [vmem:[#allocation3 + $0x50] sm:$0xff] %vm2953_vm0, %v2972_v0  ;;  %244 = vperm.xlu0 %1804, %v208_v15   ;;  %v584_v15 = vadd.s32 56, %v2203_v51 }
  0x20   :  { %65 = vst.msk [vmem:[#allocation3 + $0x58] sm:$0xff] %vm2953_vm0, %v2972_v0  ;;  %140 = vmatpush.xpose.msra.mxu0 %v127_v16  ;;  %1768 = vmatpush.xpose.msra.mxu1 %v127_v16 }
  0x21   :  { %66 = vst.msk [vmem:[#allocation3 + $0x60] sm:$0xff] %vm2953_vm0, %v2972_v0  ;;  %1769 = vmatpush.xpose.msra.mxu2 %v127_v16  ;;  %1770 = vmatpush.xpose.msra.mxu3 %v127_v16 }
  0x22   :  { %67 = vst.msk [vmem:[#allocation3 + $0x68] sm:$0xff] %vm2953_vm0, %v2972_v0  ;;  %247 = vperm.xlu1 %1805, %v209_v18   ;;  %250 = vperm.xlu2 %1806, %v210_v25   ;;  %v3008_v18 = vmov 0 }
  0x23   :  { %68 = vst.msk [vmem:[#allocation3 + $0x70] sm:$0xff] %vm2953_vm0, %v2972_v0 }
  0x24   :  { %69 = vst.msk [vmem:[#allocation3 + $0x78] sm:$0xff] %vm2953_vm0, %v2972_v0  ;;  %141 = vmatpush.xpose.msra.mxu0 %v126_v19  ;;  %1771 = vmatpush.xpose.msra.mxu1 %v126_v19 }
  0x25   :  { %70 = vst.msk [vmem:[#allocation4] sm:$0xff] %vm2953_vm0, %v2972_v0  ;;  %1772 = vmatpush.xpose.msra.mxu2 %v126_v19  ;;  %1773 = vmatpush.xpose.msra.mxu3 %v126_v19 }
  0x26   :  { %71 = vst.msk [vmem:[#allocation4 + $0x8] sm:$0xff] %vm2953_vm0, %v2972_v0 }
  0x27   :  { %72 = vst.msk [vmem:[#allocation4 + $0x10] sm:$0xff] %vm2953_vm0, %v2972_v0  ;;  %253 = vperm.xlu0 %1804, %v211_v20  }
  0x28   :  { %73 = vst.msk [vmem:[#allocation4 + $0x18] sm:$0xff] %vm2953_vm0, %v2972_v0  ;;  %142 = vmatpush.xpose.msra.mxu0 %v125_v21  ;;  %1774 = vmatpush.xpose.msra.mxu1 %v125_v21 }
  0x29   :  { %74 = vst.msk [vmem:[#allocation4 + $0x20] sm:$0xff] %vm2953_vm0, %v2972_v0  ;;  %1775 = vmatpush.xpose.msra.mxu2 %v125_v21  ;;  %1776 = vmatpush.xpose.msra.mxu3 %v125_v21  ;;  %v590_v21 = vadd.s32 104, %v2203_v51 }
  0x2a   :  { %75 = vst.msk [vmem:[#allocation4 + $0x28] sm:$0xff] %vm2953_vm0, %v2972_v0  ;;  %256 = vperm.xlu1 %1805, %v212_v23   ;;  %259 = vperm.xlu2 %1806, %v213_v29   ;;  %v3015_v23 = vmov 0 }
  0x2b   :  { %76 = vst.msk [vmem:[#allocation4 + $0x30] sm:$0xff] %vm2953_vm0, %v2972_v0 }
  0x2c   :  { %77 = vst.msk [vmem:[#allocation4 + $0x38] sm:$0xff] %vm2953_vm0, %v2972_v0  ;;  %143 = vmatpush.xpose.msra.mxu0 %v124_v24  ;;  %1777 = vmatpush.xpose.msra.mxu1 %v124_v24 }
  0x2d   :  { %78 = vst.msk [vmem:[#allocation4 + $0x40] sm:$0xff] %vm2953_vm0, %v2972_v0  ;;  %1778 = vmatpush.xpose.msra.mxu2 %v124_v24  ;;  %1779 = vmatpush.xpose.msra.mxu3 %v124_v24 }
  0x2e   :  { %79 = vst.msk [vmem:[#allocation4 + $0x48] sm:$0xff] %vm2953_vm0, %v2972_v0 }
  0x2f   :  { %80 = vst.msk [vmem:[#allocation4 + $0x50] sm:$0xff] %vm2953_vm0, %v2972_v0  ;;  %262 = vperm.xlu0 %1804, %v214_v26   ;;  %v586_v26 = vadd.s32 72, %v2203_v51 }
  0x30   :  { %81 = vst.msk [vmem:[#allocation4 + $0x58] sm:$0xff] %vm2953_vm0, %v2972_v0  ;;  %144 = vmatpush.xpose.msra.mxu0 %v123_v27  ;;  %1780 = vmatpush.xpose.msra.mxu1 %v123_v27 }
  0x31   :  { %82 = vst.msk [vmem:[#allocation4 + $0x60] sm:$0xff] %vm2953_vm0, %v2972_v0  ;;  %1781 = vmatpush.xpose.msra.mxu2 %v123_v27  ;;  %1782 = vmatpush.xpose.msra.mxu3 %v123_v27  ;;  %v3018_v27 = vmov 0 }
  0x32   :  { %83 = vst.msk [vmem:[#allocation4 + $0x68] sm:$0xff] %vm2953_vm0, %v2972_v0 }
  0x33   :  { %84 = vst.msk [vmem:[#allocation4 + $0x70] sm:$0xff] %vm2953_vm0, %v2972_v0 }
  0x34   :  { %85 = vst.msk [vmem:[#allocation4 + $0x78] sm:$0xff] %vm2953_vm0, %v2972_v0  ;;  %145 = vmatpush.xpose.msra.mxu0 %v122_v28  ;;  %1783 = vmatpush.xpose.msra.mxu1 %v122_v28 }
  0x35   :  { %86 = vst.msk [vmem:[#allocation5] sm:$0xff] %vm2953_vm0, %v2972_v0  ;;  %1784 = vmatpush.xpose.msra.mxu2 %v122_v28  ;;  %1785 = vmatpush.xpose.msra.mxu3 %v122_v28 }
  0x36   :  { %87 = vst.msk [vmem:[#allocation5 + $0x8] sm:$0xff] %vm2953_vm0, %v2972_v0 }
  0x37   :  { %88 = vst.msk [vmem:[#allocation5 + $0x10] sm:$0xff] %vm2953_vm0, %v2972_v0 }
  0x38   :  { %89 = vst.msk [vmem:[#allocation5 + $0x18] sm:$0xff] %vm2953_vm0, %v2972_v0  ;;  %146 = vmatpush.xpose.msra.mxu0 %v121_v30  ;;  %1786 = vmatpush.xpose.msra.mxu1 %v121_v30 }
  0x39   :  { %90 = vst.msk [vmem:[#allocation5 + $0x20] sm:$0xff] %vm2953_vm0, %v2972_v0  ;;  %1787 = vmatpush.xpose.msra.mxu2 %v121_v30  ;;  %1788 = vmatpush.xpose.msra.mxu3 %v121_v30  ;;  %v3020_v30 = vmov 0 }
  0x3a   :  { %91 = vst.msk [vmem:[#allocation5 + $0x28] sm:$0xff] %vm2953_vm0, %v2972_v0 }
  0x3b   :  { %92 = vst.msk [vmem:[#allocation5 + $0x30] sm:$0xff] %vm2953_vm0, %v2972_v0 }
  0x3c   :  { %93 = vst.msk [vmem:[#allocation5 + $0x38] sm:$0xff] %vm2953_vm0, %v2972_v0  ;;  %147 = vmatpush.xpose.msra.mxu0 %v120_v31  ;;  %1789 = vmatpush.xpose.msra.mxu1 %v120_v31 }
  0x3d   :  { %94 = vst.msk [vmem:[#allocation5 + $0x40] sm:$0xff] %vm2953_vm0, %v2972_v0  ;;  %1790 = vmatpush.xpose.msra.mxu2 %v120_v31  ;;  %1791 = vmatpush.xpose.msra.mxu3 %v120_v31  ;;  %v3022_v31 = vmov 0 }
  0x3e   :  { %95 = vst.msk [vmem:[#allocation5 + $0x48] sm:$0xff] %vm2953_vm0, %v2972_v0 }
  0x3f   :  { %96 = vst.msk [vmem:[#allocation5 + $0x50] sm:$0xff] %vm2953_vm0, %v2972_v0 }
  0x40   :  { %97 = vst.msk [vmem:[#allocation5 + $0x58] sm:$0xff] %vm2953_vm0, %v2972_v0  ;;  %148 = vmatpush.xpose.msra.mxu0 %v119_v32  ;;  %1792 = vmatpush.xpose.msra.mxu1 %v119_v32 }
  0x41   :  { %98 = vst.msk [vmem:[#allocation5 + $0x60] sm:$0xff] %vm2953_vm0, %v2972_v0  ;;  %1793 = vmatpush.xpose.msra.mxu2 %v119_v32  ;;  %1794 = vmatpush.xpose.msra.mxu3 %v119_v32 }
  0x42   :  { %99 = vst.msk [vmem:[#allocation5 + $0x68] sm:$0xff] %vm2953_vm0, %v2972_v0 }
  0x43   :  { %100 = vst.msk [vmem:[#allocation5 + $0x70] sm:$0xff] %vm2953_vm0, %v2972_v0 }
  0x44   :  { %101 = vst.msk [vmem:[#allocation5 + $0x78] sm:$0xff] %vm2953_vm0, %v2972_v0  ;;  %149 = vmatpush.xpose.msra.mxu0 %v118_v33  ;;  %1795 = vmatpush.xpose.msra.mxu1 %v118_v33  ;;  %vm2295_vm0 = vmand %vm620_vm15, %vm2954_vm2  ;;  %vm623_vm2 = vcmp.ne.s32.totalorder %v585_v12, %v2205_v52 }
  0x45   :  { %1796 = vmatpush.xpose.msra.mxu2 %v118_v33  ;;  %1797 = vmatpush.xpose.msra.mxu3 %v118_v33  ;;  %v3007_v17 = vsel %vm2295_vm0, 4294967295, %v3006_v17  ;;  %v588_v33 = vadd.s32 88, %v2203_v51 }
  0x47   :  { %150 = vmatmul.f32.vlgmr.msra.gmra.mxu0 %v102_v34  ;;  %162 = vmatmul.f32.vlgmr.msra.gmra.mxu1 %v106_v35 }
  0x48   :  { %174 = vmatmul.f32.vlgmr.msra.gmra.mxu2 %v110_v36  ;;  %186 = vmatmul.f32.vlgmr.msra.gmra.mxu3 %v114_v37  ;;  %v3026_v36 = vmov 0  ;;  %v587_v37 = vadd.s32 80, %v2203_v51 }
  0x4f   :  { %153 = vmatmul.f32.gmra.mxu0 %v103_v38  ;;  %165 = vmatmul.f32.gmra.mxu1 %v107_v39  ;;  %v3030_v38 = vmov 0  ;;  %v591_v39 = vadd.s32 112, %v2203_v51 }
  0x50   :  { %177 = vmatmul.f32.gmra.mxu2 %v111_v40  ;;  %189 = vmatmul.f32.gmra.mxu3 %v115_v41  ;;  %v3034_v40 = vmov 0  ;;  %v3037_v41 = vmov 0 }
  0x57   :  { %156 = vmatmul.f32.gmra.mxu0 %v104_v42  ;;  %168 = vmatmul.f32.gmra.mxu1 %v108_v43  ;;  %v589_v43 = vadd.s32 96, %v2203_v51 }
  0x58   :  { %180 = vmatmul.f32.gmra.mxu2 %v112_v44  ;;  %192 = vmatmul.f32.gmra.mxu3 %v116_v45 }
  0x5f   :  { %159 = vmatmul.f32.gmra.mxu0 %v105_v46  ;;  %171 = vmatmul.f32.gmra.mxu1 %v109_v47 }
  0x60   :  { %183 = vmatmul.f32.gmra.mxu2 %v113_v48  ;;  %195 = vmatmul.f32.gmra.mxu3 %v117_v49 }
  0x64   :  { %v230_v53 = vpop.permute.xlu2 %229 }
  0x6c   :  { %v233_v2 = vpop.permute.xlu2 %232 }
  0x6d   :  { %vm270_vm12 = vcmp.eq.s32.totalorder %v233_v2, %v2214_v55 }
  0x74   :  { %v242_v24 = vpop.permute.xlu2 %241 }
  0x79   :  { %v218_v57 = vpop.permute.xlu0 %217 }
  0x7a   :  { %vm265_vm5 = vcmp.eq.s32.totalorder %v218_v57, %v2214_v55  ;;  %v851_v57 = vld [vmem:[#allocation5 + $0x58] sm:$0xff] }
  0x7b   :  { %vm2228_vm6 = vmand %vm265_vm5, %vm2218_vm3  ;;  %vm269_vm5 = vcmp.eq.s32.totalorder %v230_v53, %v2214_v55 }
  0x7c   :  { %v224_v60 = vpop.permute.xlu1 %223  ;;  %v1718_v63 = vsel %vm2228_vm6, 1.0, %v2972_v0  ;;  %vm2311_vm15 = vmand %vm269_vm5, %vm2274_vm4  ;;  %vm273_vm4 = vcmp.eq.s32.totalorder %v242_v24, %v2214_v55  ;;  %vm3028_vm5 = vcmp.lt.s32.totalorder %v2205_v52, 8  ;;  %v251_v46 = vpop.permute.xlu2 %250 }
  0x7d   :  { %vm267_vm7 = vcmp.eq.s32.totalorder %v224_v60, %v2214_v55  ;;  %888 = vadd.xlane.f32.xlu2 %v1718_v63  ;;  %v1722_v28 = vsel %vm2311_vm15, 1.0, %v2972_v0 }
  0x7e   :  { %vm2248_vm11 = vmand %vm267_vm7, %vm2239_vm8  ;;  %vm3014_vm8 = vcmp.lt.s32.totalorder %v2205_v52, 8 }
  0x7f   :  { %v2997_v4 = vsel %vm2248_vm11, 4294967295, %v2996_v4  ;;  %v1720_v10 = vsel %vm2248_vm11, 1.0, %v2972_v0  ;;  %vm3036_vm11 = vmmov %vm3028_vm5 }
  0x81   :  { %v221_v6 = vpop.permute.xlu0 %220 }
  0x82   :  { %vm266_vm1 = vcmp.eq.s32.totalorder %v221_v6, %v2214_v55 }
  0x83   :  { %vm2282_vm7 = vmand %vm266_vm1, %vm2255_vm13 }
  0x84   :  { %v227_v13 = vpop.permute.xlu1 %226  ;;  %v3005_v14 = vsel %vm2282_vm7, 4294967295, %v3004_v14  ;;  %v1719_v16 = vsel %vm2282_vm7, 1.0, %v2972_v0  ;;  %vm2326_vm13 = vmand %vm621_vm9, %vm3014_vm8 }
  0x85   :  { %vm268_vm10 = vcmp.eq.s32.totalorder %v227_v13, %v2214_v55  ;;  %890 = vadd.xlane.f32.xlu0 %v1719_v16  ;;  %892 = vadd.xlane.f32.xlu2 %v1720_v10  ;;  %v3016_v23 = vsel %vm2326_vm13, 4294967295, %v3015_v23 }
  0x86   :  { %vm2301_vm1 = vmand %vm268_vm10, %vm2261_vm14  ;;  %vm622_vm14 = vcmp.ne.s32.totalorder %v584_v15, %v2205_v52 }
  0x87   :  { %v3009_v18 = vsel %vm2301_vm1, 4294967295, %v3008_v18  ;;  %v1721_v19 = vsel %vm2301_vm1, 1.0, %v2972_v0  ;;  %vm2319_vm10 = vmand %vm270_vm12, %vm2295_vm0 }
  0x88   :  { %894 = vadd.xlane.f32.xlu1 %v1721_v19  ;;  %vm3017_vm12 = vmmov %vm3014_vm8  ;;  %v1723_v29 = vsel %vm2319_vm10, 1.0, %v2972_v0 }
  0x89   :  { %v236_v25 = vpop.permute.xlu0 %235  ;;  %vm2335_vm0 = vmand %vm623_vm2, %vm3017_vm12 }
  0x8a   :  { %v3019_v27 = vsel %vm2335_vm0, 4294967295, %v3018_v27  ;;  %vm271_vm3 = vcmp.eq.s32.totalorder %v236_v25, %v2214_v55  ;;  %vm2348_vm9 = vmand %vm622_vm14, %vm3014_vm8 }
  0x8b   :  { %v3021_v30 = vsel %vm2348_vm9, 4294967295, %v3020_v30  ;;  %vm2354_vm2 = vmand %vm271_vm3, %vm2326_vm13  ;;  %vm624_vm3 = vcmp.ne.s32.totalorder %v586_v26, %v2205_v52  ;;  %vm3029_vm13 = vcmp.ne.s32.totalorder %v590_v21, %v2205_v52  ;;  %v260_v26 = vpop.permute.xlu2 %259 }
  0x8c   :  { %v3023_v31 = vsel %vm2354_vm2, 4294967295, %v3022_v31  ;;  %v239_v32 = vpop.permute.xlu1 %238  ;;  %v1724_v34 = vsel %vm2354_vm2, 1.0, %v2972_v0  ;;  %vm2365_vm14 = vmand %vm273_vm4, %vm2335_vm0  ;;  %vm626_vm0 = vcmp.ne.s32.totalorder %v588_v33, %v2205_v52 }
  0x8d   :  { %vm272_vm12 = vcmp.eq.s32.totalorder %v239_v32, %v2214_v55  ;;  %896 = vadd.xlane.f32.xlu0 %v1722_v28  ;;  %898 = vadd.xlane.f32.xlu2 %v1723_v29  ;;  %vm2381_vm4 = vmand %vm3029_vm13, %vm3028_vm5  ;;  %vm629_vm13 = vcmp.ne.s32.totalorder %v591_v39, %v2205_v52  ;;  %v1726_v47 = vsel %vm2365_vm14, 1.0, %v2972_v0  ;;  %v529_v28 = vld [vmem:[#allocation3 + $0x40] sm:$0xff] }
  0x8e   :  { %vm2372_vm8 = vmand %vm272_vm12, %vm2348_vm9  ;;  %v3031_v38 = vsel %vm2381_vm4, 4294967295, %v3030_v38  ;;  %vm3033_vm9 = vcmp.ne.s32.totalorder %v592_v9, %v2205_v52 }
  0x8f   :  { %v3027_v36 = vsel %vm2372_vm8, 4294967295, %v3026_v36  ;;  %vm3032_vm12 = vmmov %vm3028_vm5  ;;  %vm625_vm5 = vcmp.ne.s32.totalorder %v587_v37, %v2205_v52  ;;  %v1725_v45 = vsel %vm2372_vm8, 1.0, %v2972_v0 }
  0x90   :  { %900 = vadd.xlane.f32.xlu1 %v1724_v34  ;;  %vm2391_vm1 = vmand %vm3033_vm9, %vm3032_vm12  ;;  %vm276_vm12 = vcmp.eq.s32.totalorder %v251_v46, %v2214_v55  ;;  %v1907_v46 = vmov -1e+30  }
  0x91   :  { %v3035_v40 = vsel %vm2391_vm1, 4294967295, %v3034_v40  ;;  %vm2397_vm2 = vmand %vm624_vm3, %vm3036_vm11  ;;  %v245_v42 = vpop.permute.xlu0 %244 }
  0x92   :  { %v3038_v41 = vsel %vm2397_vm2, 4294967295, %v3037_v41  ;;  %vm3039_vm4 = vmmov %vm3036_vm11  ;;  %vm274_vm9 = vcmp.eq.s32.totalorder %v245_v42, %v2214_v55 }
  0x93   :  { %vm2406_vm7 = vmand %vm629_vm13, %vm3039_vm4 }
  0x94   :  { %vm3042_vm11 = vmmov %vm3039_vm4  ;;  %v248_v50 = vpop.permute.xlu1 %247 }
  0x95   :  { %vm2419_vm3 = vmand %vm626_vm0, %vm3042_vm11  ;;  %vm275_vm13 = vcmp.eq.s32.totalorder %v248_v50, %v2214_v55  ;;  %902 = vadd.xlane.f32.xlu0 %v1725_v45  ;;  %904 = vadd.xlane.f32.xlu2 %v1726_v47  ;;  %v842_v45 = vld [vmem:[#allocation5 + $0x10] sm:$0xff]  ;;  %v843_v47 = vld [vmem:[#allocation5 + $0x18] sm:$0xff] }
  0x96   :  { %vm2425_vm4 = vmand %vm274_vm9, %vm2397_vm2  ;;  %vm627_vm9 = vcmp.ne.s32.totalorder %v589_v43, %v2205_v52  ;;  %v841_v43 = vld [vmem:[#allocation5 + $0x8] sm:$0xff] }
  0x97   :  { %v1727_v51 = vsel %vm2425_vm4, 1.0, %v2972_v0  ;;  %vm3047_vm0 = vmmov %vm3042_vm11 }
  0x98   :  { %vm2436_vm11 = vmand %vm625_vm5, %vm3047_vm0  ;;  %906 = vadd.xlane.f32.xlu1 %v1727_v51 }
  0x99   :  { %vm2443_vm2 = vmand %vm276_vm12, %vm2419_vm3  ;;  %v254_v59 = vpop.permute.xlu0 %253 }
  0x9a   :  { %vm2449_vm1 = vmand %vm275_vm13, %vm2436_vm11  ;;  %vm277_vm8 = vcmp.eq.s32.totalorder %v254_v59, %v2214_v55  ;;  %v1729_v62 = vsel %vm2443_vm2, 1.0, %v2972_v0  ;;  %vm279_vm13 = vcmp.eq.s32.totalorder %v260_v26, %v2214_v55 }
  0x9b   :  { %vm3054_vm5 = vmmov %vm3047_vm0  ;;  %v1728_v60 = vsel %vm2449_vm1, 1.0, %v2972_v0 }
  0x9c   :  { %vm2455_vm0 = vmand %vm627_vm9, %vm3054_vm5  ;;  %v257_v22 = vpop.permute.xlu1 %256  ;;  %vm3066_vm5 = vcmask 7168  }
  0x9d   :  { %vm2468_vm12 = vmand %vm277_vm8, %vm2455_vm0  ;;  %908 = vadd.xlane.f32.xlu0 %v1728_v60  ;;  %910 = vadd.xlane.f32.xlu2 %v1729_v62 }
  0x9e   :  { %v1730_v52 = vsel %vm2468_vm12, 1.0, %v2972_v0  ;;  %vm2545_vm9 = vmand %vm279_vm13, %vm2406_vm7 }
  0xa0   :  { %912 = vadd.xlane.f32.xlu1 %v1730_v52 }
  0xa1   :  { %v2535_v32 = vpop.permute.xlu0 %262 }
  0xc4   :  { %v2475_v2 = vpop.f32.mrf.mxu0  ;;  %v2481_v6 = vpop.f32.mrf.mxu1 }
  0xc5   :  { %281 = vmax.xlane.f32.xlu1 %v2475_v2  ;;  %v760_v3 = vsel %vm2228_vm6, %v2475_v2, 0.0  ;;  %v764_v61 = vsel %vm2311_vm15, %v2481_v6, 0.0  ;;  %vm3059_vm6 = vnez %v3005_v14  ;;  %vm3060_vm15 = vnez %v3023_v31  ;;  %v840_v31 = vld [vmem:[#allocation5] sm:$0xff] }
  0xc6   :  { %776 = vadd.xlane.f32.xlu2 %v760_v3  ;;  %v844_v3 = vld [vmem:[#allocation5 + $0x20] sm:$0xff] }
  0xcb   :  { %v2483_v8 = vpop.f32.mrf.mxu3  ;;  %v2485_v9 = vpop.f32.mrf.mxu2 }
  0xcc   :  { %305 = vmax.xlane.f32.xlu0 %v2483_v8  ;;  %v768_v10 = vsel %vm2365_vm14, %v2485_v9, 0.0  ;;  %v2496_v12 = vpop.f32.mrf.mxu0  ;;  %v2499_v13 = vpop.f32.mrf.mxu1  ;;  %v772_v16 = vsel %vm2468_vm12, %v2483_v8, 0.0  ;;  %vm3061_vm14 = vnez %v3031_v38 }
  0xcd   :  { %289 = vmax.xlane.f32.xlu1 %v2481_v6  ;;  %v765_v15 = vsel %vm2319_vm10, %v2499_v13, 0.0  ;;  %v761_v24 = vsel %vm3059_vm6, %v2496_v12, 0.0  ;;  %vm278_vm10 = vcmp.eq.s32.totalorder %v257_v22, %v2214_v55 }
  0xce   :  { %297 = vmax.xlane.f32.xlu2 %v2485_v9  ;;  %vm2524_vm8 = vmand %vm278_vm10, %vm3061_vm14 }
  0xd3   :  { %v2510_v20 = vpop.f32.mrf.mxu3  ;;  %v2512_v21 = vpop.f32.mrf.mxu2 }
  0xd4   :  { %792 = vadd.xlane.f32.xlu0 %v768_v10  ;;  %v2508_v19 = vpop.f32.mrf.mxu1  ;;  %v773_v14 = vsel %vm2524_vm8, %v2510_v20, 0.0  ;;  %v2538_v35 = vpop.f32.mrf.mxu0  ;;  %v769_v37 = vsel %vm2425_vm4, %v2512_v21, 0.0  ;;  %vm3067_vm4 = vmmov %vm3066_vm5  ;;  %v845_v10 = vld [vmem:[#allocation5 + $0x28] sm:$0xff] }
  0xd5   :  { %784 = vadd.xlane.f32.xlu1 %v764_v61  ;;  %v766_v25 = vsel %vm3060_vm15, %v2508_v19, 0.0  ;;  %38 = vst.msk [vmem:[#allocation2] sm:$0xff] %vm3067_vm4, %v1907_v46  ;;  %vm3068_vm12 = vmmov %vm3067_vm4  ;;  %v846_v61 = vld [vmem:[#allocation5 + $0x30] sm:$0xff] }
  0xd6   :  { %283 = vmax.xlane.f32.xlu2 %v2496_v12  ;;  %39 = vst.msk [vmem:[#allocation2 + $0x8] sm:$0xff] %vm3068_vm12, %v1907_v46  ;;  %vm3069_vm6 = vmmov %vm3067_vm4 }
  0xd7   :  { %40 = vst.msk [vmem:[#allocation2 + $0x10] sm:$0xff] %vm3069_vm6, %v1907_v46  ;;  %vm3070_vm15 = vmmov %vm3067_vm4 }
  0xd8   :  { %41 = vst.msk [vmem:[#allocation2 + $0x18] sm:$0xff] %vm3070_vm15, %v1907_v46  ;;  %vm3071_vm10 = vmmov %vm3067_vm4 }
  0xd9   :  { %42 = vst.msk [vmem:[#allocation2 + $0x20] sm:$0xff] %vm3071_vm10, %v1907_v46  ;;  %vm3072_vm13 = vmmov %vm3067_vm4 }
  0xda   :  { %vm3074_vm12 = vmmov %vm3067_vm4  ;;  %51 = vst.msk [vmem:[#allocation2 + $0x68] sm:$0xff] %vm3067_vm4, %v1907_v46 }
  0xdb   :  { %v2531_v29 = vpop.f32.mrf.mxu3  ;;  %v2564_v62 = vpop.f32.mrf.mxu2  ;;  %43 = vst.msk [vmem:[#allocation2 + $0x28] sm:$0xff] %vm3074_vm12, %v1907_v46  ;;  %vm3075_vm6 = vmmov %vm3067_vm4  ;;  %vm3080_vm12 = vnez %v3009_v18 }
  0xdc   :  { %786 = vadd.xlane.f32.xlu0 %v765_v15  ;;  %v774_v42 = vsel %vm2545_vm9, %v2531_v29, 0.0  ;;  %v2567_v52 = vpop.f32.mrf.mxu0  ;;  %44 = vst.msk [vmem:[#allocation2 + $0x30] sm:$0xff] %vm3075_vm6, %v1907_v46  ;;  %vm3076_vm15 = vmmov %vm3067_vm4  ;;  %v2584_v26 = vpop.f32.mrf.mxu1 }
  0xdd   :  { %800 = vadd.xlane.f32.xlu1 %v772_v16  ;;  %45 = vst.msk [vmem:[#allocation2 + $0x38] sm:$0xff] %vm3076_vm15, %v1907_v46  ;;  %vm3077_vm10 = vmmov %vm3067_vm4 }
  0xde   :  { %291 = vmax.xlane.f32.xlu2 %v2499_v13  ;;  %46 = vst.msk [vmem:[#allocation2 + $0x40] sm:$0xff] %vm3077_vm10, %v1907_v46  ;;  %vm3081_vm6 = vmmov %vm3067_vm4 }
  0xdf   :  { %vm3082_vm15 = vmmov %vm3067_vm4 }
  0xe0   :  { %vm3083_vm10 = vmmov %vm3067_vm4 }
  0xe1   :  { %48 = vst.msk [vmem:[#allocation2 + $0x50] sm:$0xff] %vm3083_vm10, %v1907_v46  ;;  %vm3089_vm10 = vmmov %vm3067_vm4 }
  0xe3   :  { %v2750_v0 = vld [vmem:[#allocation2 + $0x30] sm:$0xff] }
  0xe4   :  { %299 = vmax.xlane.f32.xlu0 %v2512_v21  ;;  %3120 = vst [vmem:[#allocation14_spill] sm:$0xff] %v2750_v0 }
  0xe5   :  { %778 = vadd.xlane.f32.xlu1 %v761_v24 }
  0xe6   :  { %788 = vadd.xlane.f32.xlu2 %v766_v25 }
  0xec   :  { %802 = vadd.xlane.f32.xlu0 %v773_v14 }
  0xed   :  { %307 = vmax.xlane.f32.xlu1 %v2510_v20 }
  0xee   :  { %309 = vmax.xlane.f32.xlu2 %v2531_v29 }
  0xf0   :  { %v889_v33 = vpop.xlane.xlu2 %888 }
  0xf1   :  { %v920_v34 = vadd.f32 %v889_v33, %v840_v31  ;;  %v763_v33 = vsel %vm3080_vm12, %v2567_v52, 0.0  ;;  %vm3086_vm12 = vmmov %vm3067_vm4 }
  0xf2   :  { %52 = vst.msk [vmem:[#allocation2 + $0x70] sm:$0xff] %vm3086_vm12, %v1907_v46 }
  0xf3   :  { %936 = vst.msk [vmem:[#allocation5] sm:$0xff] %vm3066_vm5, %v920_v34  ;;  %vm3073_vm5 = vmmov %vm3067_vm4  ;;  %v847_v34 = vld [vmem:[#allocation5 + $0x38] sm:$0xff] }
  0xf4   :  { %285 = vmax.xlane.f32.xlu0 %v2538_v35 }
  0xf5   :  { %794 = vadd.xlane.f32.xlu1 %v769_v37  ;;  %v848_v37 = vld [vmem:[#allocation5 + $0x40] sm:$0xff] }
  0xf6   :  { %804 = vadd.xlane.f32.xlu2 %v774_v42 }
  0xf8   :  { %v891_v49 = vpop.xlane.xlu0 %890  ;;  %v893_v50 = vpop.xlane.xlu2 %892 }
  0xf9   :  { %v921_v51 = vadd.f32 %v891_v49, %v841_v43  ;;  %v922_v59 = vadd.f32 %v893_v50, %v842_v45  ;;  %v770_v49 = vsel %vm2449_vm1, %v2564_v62, 0.0  ;;  %vm3091_vm1 = vmmov %vm3067_vm4 }
  0xfa   :  { %53 = vst.msk [vmem:[#allocation2 + $0x78] sm:$0xff] %vm3091_vm1, %v1907_v46 }
  0xfb   :  { %v895_v60 = vpop.xlane.xlu1 %894  ;;  %937 = vst.msk [vmem:[#allocation5 + $0x8] sm:$0xff] %vm3072_vm13, %v921_v51  ;;  %vm3078_vm13 = vmmov %vm3067_vm4 }
  0xfc   :  { %v923_v63 = vadd.f32 %v895_v60, %v843_v47  ;;  %293 = vmax.xlane.f32.xlu0 %v2508_v19  ;;  %938 = vst.msk [vmem:[#allocation5 + $0x10] sm:$0xff] %vm3073_vm5, %v922_v59  ;;  %vm3079_vm5 = vnez %v2997_v4  ;;  %v849_v4 = vld [vmem:[#allocation5 + $0x48] sm:$0xff]  ;;  %v2613_v59 = vpop.f32.mrf.mxu2  ;;  %v850_v60 = vld [vmem:[#allocation5 + $0x50] sm:$0xff] }
  0xfd   :  { %301 = vmax.xlane.f32.xlu1 %v2564_v62  ;;  %47 = vst.msk [vmem:[#allocation2 + $0x48] sm:$0xff] %vm3078_vm13, %v1907_v46  ;;  %v762_v14 = vsel %vm3079_vm5, %v2538_v35, 0.0  ;;  %vm3084_vm13 = vmmov %vm3067_vm4 }
  0xfe   :  { %939 = vst.msk [vmem:[#allocation5 + $0x18] sm:$0xff] %vm3067_vm4, %v923_v63  ;;  %287 = vmax.xlane.f32.xlu2 %v2567_v52  ;;  %vm3085_vm5 = vmmov %vm3067_vm4  ;;  %v852_v63 = vld [vmem:[#allocation5 + $0x60] sm:$0xff] }
  0xff   :  { %49 = vst.msk [vmem:[#allocation2 + $0x58] sm:$0xff] %vm3084_vm13, %v1907_v46  ;;  %vm3090_vm13 = vmmov %vm3067_vm4 }
 0x100   :  { %v897_v15 = vpop.xlane.xlu0 %896  ;;  %v899_v16 = vpop.xlane.xlu2 %898  ;;  %50 = vst.msk [vmem:[#allocation2 + $0x60] sm:$0xff] %vm3085_vm5, %v1907_v46  ;;  %vm280_vm5 = vcmp.eq.s32.totalorder %v2535_v32, %v2214_v55  ;;  %v771_v55 = vsel %vm2443_vm2, %v2613_v59, 0.0  ;;  %v2640_v32 = vld [vmem:[#allocation2] sm:$0xff]  ;;  %vm3099_vm2 = vmmov %vm3091_vm1 }
 0x101   :  { %v924_v24 = vadd.f32 %v897_v15, %v844_v3  ;;  %v925_v22 = vadd.f32 %v899_v16, %v845_v10 }
 0x103   :  { %v901_v25 = vpop.xlane.xlu1 %900  ;;  %940 = vst.msk [vmem:[#allocation5 + $0x20] sm:$0xff] %vm3067_vm4, %v924_v24 }
 0x104   :  { %v926_v31 = vadd.f32 %v901_v25, %v846_v61  ;;  %780 = vadd.xlane.f32.xlu0 %v762_v14  ;;  %941 = vst.msk [vmem:[#allocation5 + $0x28] sm:$0xff] %vm3081_vm6, %v925_v22  ;;  %vm3087_vm6 = vnez %v3027_v36  ;;  %v2622_v36 = vpop.f32.mrf.mxu3  ;;  %v744_v25 = vld [vmem:[#allocation4] sm:$0xff] }
 0x105   :  { %295 = vmax.xlane.f32.xlu1 %v2584_v26  ;;  %v767_v50 = vsel %vm3087_vm6, %v2584_v26, 0.0  ;;  %vm3095_vm6 = vmmov %vm3091_vm1 }
 0x106   :  { %942 = vst.msk [vmem:[#allocation5 + $0x30] sm:$0xff] %vm3082_vm15, %v926_v31  ;;  %782 = vadd.xlane.f32.xlu2 %v763_v33  ;;  %vm3088_vm15 = vmmov %vm3067_vm4  ;;  %vm3092_vm4 = vnez %v3035_v40 }
 0x107   :  { %vm2626_vm12 = vmand %vm280_vm5, %vm3092_vm4  ;;  %v2651_v54 = vld [vmem:[#allocation2 + $0x60] sm:$0xff] }
 0x108   :  { %v903_v42 = vpop.xlane.xlu0 %902  ;;  %v905_v43 = vpop.xlane.xlu2 %904  ;;  %v775_v46 = vsel %vm2626_vm12, %v2622_v36, 0.0  ;;  %vm3100_vm5 = vmmov %vm3091_vm1 }
 0x109   :  { %v927_v18 = vadd.f32 %v903_v42, %v847_v34  ;;  %v928_v45 = vadd.f32 %v905_v43, %v848_v37  ;;  %v2655_v42 = vld [vmem:[#allocation2 + $0x40] sm:$0xff] }
 0x10b   :  { %v907_v47 = vpop.xlane.xlu1 %906  ;;  %943 = vst.msk [vmem:[#allocation5 + $0x38] sm:$0xff] %vm3088_vm15, %v927_v18  ;;  %vm3096_vm15 = vmmov %vm3091_vm1 }
 0x10c   :  { %v929_v51 = vadd.f32 %v907_v47, %v849_v4  ;;  %796 = vadd.xlane.f32.xlu0 %v770_v49  ;;  %944 = vst.msk [vmem:[#allocation5 + $0x40] sm:$0xff] %vm3089_vm10, %v928_v45  ;;  %vm3097_vm10 = vmmov %vm3091_vm1  ;;  %v2653_v4 = vld [vmem:[#allocation2 + $0x20] sm:$0xff] }
 0x10d   :  { %790 = vadd.xlane.f32.xlu1 %v767_v50 }
 0x10e   :  { %945 = vst.msk [vmem:[#allocation5 + $0x48] sm:$0xff] %vm3090_vm13, %v929_v51  ;;  %303 = vmax.xlane.f32.xlu2 %v2613_v59  ;;  %vm3098_vm13 = vmmov %vm3091_vm1  ;;  %v2717_v51 = vld [vmem:[#allocation2 + $0x68] sm:$0xff] }
 0x110   :  { %v909_v3 = vpop.xlane.xlu0 %908  ;;  %v911_v10 = vpop.xlane.xlu2 %910 }
 0x111   :  { %v930_v61 = vadd.f32 %v909_v3, %v850_v60  ;;  %v931_v15 = vadd.f32 %v911_v10, %v851_v57  ;;  %v748_v3 = vld [vmem:[#allocation4 + $0x20] sm:$0xff]  ;;  %v2681_v10 = vld [vmem:[#allocation2 + $0x8] sm:$0xff] }
 0x113   :  { %v913_v24 = vpop.xlane.xlu1 %912  ;;  %946 = vst.msk [vmem:[#allocation5 + $0x50] sm:$0xff] %vm3095_vm6, %v930_v61  ;;  %vm3101_vm6 = vmmov %vm3091_vm1 }
 0x114   :  { %v932_v22 = vadd.f32 %v913_v24, %v852_v63  ;;  %311 = vmax.xlane.f32.xlu0 %v2622_v36  ;;  %947 = vst.msk [vmem:[#allocation5 + $0x58] sm:$0xff] %vm3096_vm15, %v931_v15  ;;  %v752_v63 = vld [vmem:[#allocation4 + $0x40] sm:$0xff]  ;;  %vm3102_vm15 = vmmov %vm3091_vm1 }
 0x115   :  { %806 = vadd.xlane.f32.xlu1 %v775_v46 }
 0x116   :  { %948 = vst.msk [vmem:[#allocation5 + $0x60] sm:$0xff] %vm3097_vm10, %v932_v22  ;;  %798 = vadd.xlane.f32.xlu2 %v771_v55  ;;  %vm3103_vm10 = vmmov %vm3091_vm1 }
 0x138   :  { %v282_v14 = vpop.xlane.xlu1 %281 }
 0x139   :  { %v2643_v31 = vmax.f32 %v2640_v32, %v282_v14  ;;  %v777_v33 = vpop.xlane.xlu2 %776  ;;  %v749_v14 = vld [vmem:[#allocation4 + $0x28] sm:$0xff] }
 0x13a   :  { %v808_v34 = vadd.f32 %v777_v33, %v744_v25  ;;  %v756_v33 = vld [vmem:[#allocation4 + $0x60] sm:$0xff]  ;;  %v757_v25 = vld [vmem:[#allocation4 + $0x68] sm:$0xff] }
 0x13b   :  { %554 = vst.msk [vmem:[#allocation2] sm:$0xff] %vm3098_vm13, %v2643_v31  ;;  %395 = vperm.xlu1 %1805, %v2643_v31   ;;  %vm3104_vm13 = vmmov %vm3091_vm1  ;;  %v3153_v39 = vsub.f32 %v2640_v32, %v2643_v31 }
 0x13c   :  { %824 = vst.msk [vmem:[#allocation4] sm:$0xff] %vm3099_vm2, %v808_v34  ;;  %v2693_v34 = vld [vmem:[#allocation2 + $0x28] sm:$0xff]  ;;  %vm3105_vm2 = vmmov %vm3091_vm1 }
 0x13f   :  { %v306_v43 = vpop.xlane.xlu0 %305 }
 0x140   :  { %v290_v18 = vpop.xlane.xlu1 %289  ;;  %v2658_v45 = vmax.f32 %v2651_v54, %v306_v43 }
 0x141   :  { %v2661_v47 = vmax.f32 %v2653_v4, %v290_v18  ;;  %v298_v49 = vpop.xlane.xlu2 %297 }
 0x142   :  { %v2664_v50 = vmax.f32 %v2655_v42, %v298_v49  ;;  %566 = vst.msk [vmem:[#allocation2 + $0x60] sm:$0xff] %vm3091_vm1, %v2658_v45  ;;  %v3156_v32 = vsub.f32 %v2651_v54, %v2658_v45 }
 0x143   :  { %415 = vperm.xlu0 %1804, %v2661_v47   ;;  %455 = vperm.xlu1 %1805, %v2658_v45   ;;  %558 = vst.msk [vmem:[#allocation2 + $0x20] sm:$0xff] %vm3100_vm5, %v2661_v47  ;;  %vm3106_vm5 = vmmov %vm3091_vm1 }
 0x144   :  { %435 = vperm.xlu2 %1806, %v2664_v50   ;;  %562 = vst.msk [vmem:[#allocation2 + $0x40] sm:$0xff] %vm3101_vm6, %v2664_v50  ;;  %vm3107_vm6 = vmmov %vm3091_vm1  ;;  %v3152_v16 = vsub.f32 %v2655_v42, %v2664_v50  ;;  %v3155_v42 = vsub.f32 %v2653_v4, %v2661_v47  ;;  %v385_v31 = vmul.f32 1.442695, %v3156_v32 }
 0x146   :  { %v369_v50 = vmul.f32 1.442695, %v3155_v42 }
 0x147   :  { %v793_v61 = vpop.xlane.xlu0 %792 }
 0x148   :  { %v785_v15 = vpop.xlane.xlu1 %784  ;;  %v816_v24 = vadd.f32 %v793_v61, %v752_v63 }
 0x149   :  { %v812_v46 = vadd.f32 %v785_v15, %v748_v3  ;;  %v284_v22 = vpop.xlane.xlu2 %283 }
 0x14a   :  { %v2684_v55 = vmax.f32 %v2681_v10, %v284_v22  ;;  %832 = vst.msk [vmem:[#allocation4 + $0x40] sm:$0xff] %vm3102_vm15, %v816_v24  ;;  %v2705_v24 = vld [vmem:[#allocation2 + $0x48] sm:$0xff]  ;;  %v750_v22 = vld [vmem:[#allocation4 + $0x30] sm:$0xff]  ;;  %vm3108_vm15 = vmmov %vm3091_vm1 }
 0x14b   :  { %828 = vst.msk [vmem:[#allocation4 + $0x20] sm:$0xff] %vm3103_vm10, %v812_v46  ;;  %v745_v46 = vld [vmem:[#allocation4 + $0x8] sm:$0xff]  ;;  %vm3109_vm10 = vmmov %vm3091_vm1 }
 0x14c   :  { %400 = vperm.xlu2 %1806, %v2684_v55   ;;  %555 = vst.msk [vmem:[#allocation2 + $0x8] sm:$0xff] %vm3104_vm13, %v2684_v55  ;;  %vm3113_vm13 = vmmov %vm3091_vm1  ;;  %v3158_v47 = vsub.f32 %v2681_v10, %v2684_v55 }
 0x14f   :  { %v787_v43 = vpop.xlane.xlu0 %786 }
 0x150   :  { %v801_v18 = vpop.xlane.xlu1 %800  ;;  %v813_v49 = vadd.f32 %v787_v43, %v749_v14 }
 0x151   :  { %v820_v63 = vadd.f32 %v801_v18, %v756_v33  ;;  %v292_v3 = vpop.xlane.xlu2 %291 }
 0x152   :  { %v2696_v61 = vmax.f32 %v2693_v34, %v292_v3  ;;  %829 = vst.msk [vmem:[#allocation4 + $0x28] sm:$0xff] %vm3105_vm2, %v813_v49  ;;  %vm3114_vm2 = vmmov %vm3091_vm1 }
 0x153   :  { %836 = vst.msk [vmem:[#allocation4 + $0x60] sm:$0xff] %vm3091_vm1, %v820_v63 }
 0x154   :  { %420 = vperm.xlu2 %1806, %v2696_v61   ;;  %559 = vst.msk [vmem:[#allocation2 + $0x28] sm:$0xff] %vm3106_vm5, %v2696_v61  ;;  %vm3117_vm5 = vmmov %vm3091_vm1 }
 0x157   :  { %v300_v14 = vpop.xlane.xlu0 %299 }
 0x158   :  { %v779_v33 = vpop.xlane.xlu1 %778  ;;  %v2708_v43 = vmax.f32 %v2705_v24, %v300_v14  ;;  %v2719_v14 = vld [vmem:[#allocation2 + $0x70] sm:$0xff] }
 0x159   :  { %v809_v18 = vadd.f32 %v779_v33, %v745_v46  ;;  %v789_v49 = vpop.xlane.xlu2 %788  ;;  %3110 = vst [vmem:[#allocation9_spill] sm:$0xff] %v2719_v14 }
 0x15a   :  { %v814_v63 = vadd.f32 %v789_v49, %v750_v22  ;;  %563 = vst.msk [vmem:[#allocation2 + $0x48] sm:$0xff] %vm3107_vm6, %v2708_v43  ;;  %440 = vperm.xlu1 %1805, %v2708_v43   ;;  %vm3118_vm6 = vmmov %vm3091_vm1 }
 0x15b   :  { %825 = vst.msk [vmem:[#allocation4 + $0x8] sm:$0xff] %vm3108_vm15, %v809_v18  ;;  %vm3119_vm15 = vmmov %vm3091_vm1 }
 0x15c   :  { %830 = vst.msk [vmem:[#allocation4 + $0x30] sm:$0xff] %vm3109_vm10, %v814_v63  ;;  %v2738_v63 = vld [vmem:[#allocation2 + $0x10] sm:$0xff]  ;;  %vm3126_vm10 = vmmov %vm3091_vm1 }
 0x15d   :  { %3115 = vst [vmem:[#allocation12_spill] sm:$0xff] %v2738_v63 }
 0x15f   :  { %v803_v46 = vpop.xlane.xlu0 %802 }
 0x160   :  { %v308_v33 = vpop.xlane.xlu1 %307  ;;  %v821_v22 = vadd.f32 %v803_v46, %v757_v25  ;;  %v758_v46 = vld [vmem:[#allocation4 + $0x70] sm:$0xff] }
 0x161   :  { %v2722_v49 = vmax.f32 %v2717_v51, %v308_v33  ;;  %v310_v3 = vpop.xlane.xlu2 %309 }
 0x162   :  { %v2725_v60 = vmax.f32 %v2719_v14, %v310_v3  ;;  %837 = vst.msk [vmem:[#allocation4 + $0x68] sm:$0xff] %vm3113_vm13, %v821_v22  ;;  %v753_v3 = vld [vmem:[#allocation4 + $0x48] sm:$0xff]  ;;  %vm3127_vm13 = vmmov %vm3091_vm1 }
 0x163   :  { %3111 = vst [vmem:[#allocation10_spill] sm:$0xff] %v2722_v49  ;;  %460 = vperm.xlu0 %1804, %v2722_v49  }
 0x164   :  { %3112 = vst [vmem:[#allocation11_spill] sm:$0xff] %v2725_v60  ;;  %465 = vperm.xlu2 %1806, %v2725_v60  }
 0x165   :  { %567 = vst.msk [vmem:[#allocation2 + $0x68] sm:$0xff] %vm3114_vm2, %v2722_v49  ;;  %vm3128_vm2 = vmmov %vm3091_vm1 }
 0x166   :  { %568 = vst.msk [vmem:[#allocation2 + $0x70] sm:$0xff] %vm3091_vm1, %v2725_v60  ;;  %v2752_v60 = vld [vmem:[#allocation2 + $0x50] sm:$0xff] }
 0x167   :  { %v286_v33 = vpop.xlane.xlu0 %285  ;;  %3121 = vst [vmem:[#allocation15_spill] sm:$0xff] %v2752_v60 }
 0x168   :  { %v795_v22 = vpop.xlane.xlu1 %794  ;;  %v2741_v18 = vmax.f32 %v2738_v63, %v286_v33  ;;  %v2754_v33 = vld [vmem:[#allocation2 + $0x18] sm:$0xff] }
 0x169   :  { %v817_v15 = vadd.f32 %v795_v22, %v753_v3  ;;  %v805_v37 = vpop.xlane.xlu2 %804  ;;  %3122 = vst [vmem:[#allocation16_spill] sm:$0xff] %v2754_v33 }
 0x16a   :  { %3116 = vst [vmem:[#allocation13_spill] sm:$0xff] %v2741_v18  ;;  %v822_v57 = vadd.f32 %v805_v37, %v758_v46 }
 0x16b   :  { %556 = vst.msk [vmem:[#allocation2 + $0x10] sm:$0xff] %vm3117_vm5, %v2741_v18  ;;  %405 = vperm.xlu0 %1804, %v2741_v18   ;;  %vm3131_vm5 = vmmov %vm3091_vm1 }
 0x16c   :  { %833 = vst.msk [vmem:[#allocation4 + $0x48] sm:$0xff] %vm3118_vm6, %v817_v15  ;;  %vm3132_vm6 = vmmov %vm3091_vm1 }
 0x16d   :  { %838 = vst.msk [vmem:[#allocation4 + $0x70] sm:$0xff] %vm3119_vm15, %v822_v57  ;;  %v747_v57 = vld [vmem:[#allocation4 + $0x18] sm:$0xff]  ;;  %vm3135_vm15 = vmmov %vm3091_vm1 }
 0x16f   :  { %v294_v3 = vpop.xlane.xlu0 %293 }
 0x170   :  { %v302_v37 = vpop.xlane.xlu1 %301  ;;  %v2757_v46 = vmax.f32 %v2750_v0, %v294_v3  ;;  %v746_v3 = vld [vmem:[#allocation4 + $0x10] sm:$0xff] }
 0x171   :  { %v2760_v22 = vmax.f32 %v2752_v60, %v302_v37  ;;  %v288_v25 = vpop.xlane.xlu2 %287  ;;  %v2779_v37 = vld [vmem:[#allocation2 + $0x38] sm:$0xff] }
 0x172   :  { %3123 = vst [vmem:[#allocation17_spill] sm:$0xff] %v2757_v46  ;;  %v2763_v14 = vmax.f32 %v2754_v33, %v288_v25  ;;  %425 = vperm.xlu1 %1805, %v2757_v46  }
 0x173   :  { %3124 = vst [vmem:[#allocation18_spill] sm:$0xff] %v2760_v22  ;;  %445 = vperm.xlu0 %1804, %v2760_v22  }
 0x174   :  { %3125 = vst [vmem:[#allocation19_spill] sm:$0xff] %v2763_v14 }
 0x175   :  { %560 = vst.msk [vmem:[#allocation2 + $0x30] sm:$0xff] %vm3126_vm10, %v2757_v46  ;;  %vm3136_vm10 = vmmov %vm3091_vm1 }
 0x176   :  { %564 = vst.msk [vmem:[#allocation2 + $0x50] sm:$0xff] %vm3127_vm13, %v2760_v22  ;;  %vm3137_vm13 = vmmov %vm3091_vm1 }
 0x177   :  { %557 = vst.msk [vmem:[#allocation2 + $0x18] sm:$0xff] %vm3128_vm2, %v2763_v14  ;;  %v781_v0 = vpop.xlane.xlu0 %780  ;;  %vm3139_vm2 = vmmov %vm3091_vm1 }
 0x178   :  { %3129 = vst [vmem:[#allocation20_spill] sm:$0xff] %v2779_v37  ;;  %v296_v18 = vpop.xlane.xlu1 %295  ;;  %v810_v15 = vadd.f32 %v781_v0, %v746_v3  ;;  %v754_v0 = vld [vmem:[#allocation4 + $0x50] sm:$0xff]  ;;  %v751_v3 = vld [vmem:[#allocation4 + $0x38] sm:$0xff] }
 0x179   :  { %v2782_v60 = vmax.f32 %v2779_v37, %v296_v18  ;;  %v783_v46 = vpop.xlane.xlu2 %782  ;;  %v2792_v18 = vld [vmem:[#allocation2 + $0x58] sm:$0xff] }
 0x17a   :  { %v811_v63 = vadd.f32 %v783_v46, %v747_v57  ;;  %826 = vst.msk [vmem:[#allocation4 + $0x10] sm:$0xff] %vm3091_vm1, %v810_v15  ;;  %410 = vperm.xlu1 %1805, %v2763_v14  }
 0x17b   :  { %3130 = vst [vmem:[#allocation21_spill] sm:$0xff] %v2782_v60  ;;  %430 = vperm.xlu0 %1804, %v2782_v60  }
 0x17c   :  { %561 = vst.msk [vmem:[#allocation2 + $0x38] sm:$0xff] %vm3131_vm5, %v2782_v60  ;;  %vm3140_vm5 = vmmov %vm3091_vm1 }
 0x17d   :  { %827 = vst.msk [vmem:[#allocation4 + $0x18] sm:$0xff] %vm3132_vm6, %v811_v63  ;;  %v2804_v63 = vld [vmem:[#allocation2 + $0x78] sm:$0xff]  ;;  %vm3141_vm6 = vnez %v3019_v27 }
 0x17e   :  { %3133 = vst [vmem:[#allocation22_spill] sm:$0xff] %v2792_v18 }
 0x17f   :  { %v797_v33 = vpop.xlane.xlu0 %796  ;;  %3138 = vst [vmem:[#allocation24_spill] sm:$0xff] %v2804_v63 }
 0x180   :  { %v791_v46 = vpop.xlane.xlu1 %790  ;;  %v818_v57 = vadd.f32 %v797_v33, %v754_v0  ;;  %v759_v33 = vld [vmem:[#allocation4 + $0x78] sm:$0xff] }
 0x181   :  { %v815_v15 = vadd.f32 %v791_v46, %v751_v3  ;;  %v304_v22 = vpop.xlane.xlu2 %303  ;;  %v755_v0 = vld [vmem:[#allocation4 + $0x58] sm:$0xff] }
 0x182   :  { %v2795_v25 = vmax.f32 %v2792_v18, %v304_v22  ;;  %834 = vst.msk [vmem:[#allocation4 + $0x50] sm:$0xff] %vm3135_vm15, %v818_v57  ;;  %vm3142_vm15 = vnez %v2991_v56 }
 0x183   :  { %831 = vst.msk [vmem:[#allocation4 + $0x38] sm:$0xff] %vm3136_vm10, %v815_v15  ;;  %vm3143_vm10 = vnez %v3007_v17 }
 0x184   :  { %3134 = vst [vmem:[#allocation23_spill] sm:$0xff] %v2795_v25  ;;  %450 = vperm.xlu2 %1806, %v2795_v25  }
 0x185   :  { %565 = vst.msk [vmem:[#allocation2 + $0x58] sm:$0xff] %vm3137_vm13, %v2795_v25  ;;  %vm3144_vm13 = vnez %v3003_v11 }
 0x187   :  { %v312_v3 = vpop.xlane.xlu0 %311 }
 0x188   :  { %v807_v46 = vpop.xlane.xlu1 %806  ;;  %v2807_v22 = vmax.f32 %v2804_v63, %v312_v3 }
 0x189   :  { %v823_v57 = vadd.f32 %v807_v46, %v759_v33  ;;  %v799_v37 = vpop.xlane.xlu2 %798 }
 0x18a   :  { %v819_v15 = vadd.f32 %v799_v37, %v755_v0  ;;  %569 = vst.msk [vmem:[#allocation2 + $0x78] sm:$0xff] %vm3139_vm2, %v2807_v22  ;;  %470 = vperm.xlu1 %1805, %v2807_v22   ;;  %vm3145_vm2 = vnez %v2999_v5 }
 0x18b   :  { %839 = vst.msk [vmem:[#allocation4 + $0x78] sm:$0xff] %vm3091_vm1, %v823_v57  ;;  %vm3146_vm1 = vnez %v3038_v41 }
 0x18c   :  { %835 = vst.msk [vmem:[#allocation4 + $0x58] sm:$0xff] %vm3140_vm5, %v819_v15  ;;  %vm3149_vm5 = vnez %v3001_v7 }
 0x19e   :  { %v436_v25 = vpop.permute.xlu2 %435 }
 0x19f   :  { %v481_v18 = vsub.f32 %v2485_v9, %v436_v25 }
 0x1a1   :  { %v505_v14 = vmul.f32 1.442695, %v481_v18 }
 0x1a3   :  { %1808 = vpow2.f32 %v505_v14 }
 0x1a6   :  { %v401_v3 = vpop.permute.xlu2 %400 }
 0x1a9   :  { %v1809_v63 = vpop.eup %1808 }
 0x1aa   :  { %v672_v57 = vsel %vm3141_vm6, %v1809_v63, 0.0 }
 0x1ad   :  { %v396_v33 = vpop.permute.xlu1 %395 }
 0x1ae   :  { %v473_v37 = vsub.f32 %v2475_v2, %v396_v33  ;;  %v421_v0 = vpop.permute.xlu2 %420  ;;  %v474_v2 = vsub.f32 %v2496_v12, %v401_v3 }
 0x1af   :  { %v478_v46 = vsub.f32 %v2499_v13, %v421_v0 }
 0x1b0   :  { %v489_v60 = vmul.f32 1.442695, %v473_v37 }
 0x1b1   :  { %v499_v49 = vmul.f32 1.442695, %v478_v46 }
 0x1b2   :  { %1810 = vpow2.f32 %v489_v60 }
 0x1b3   :  { %1812 = vpow2.f32 %v499_v49  ;;  %v491_v49 = vmul.f32 1.442695, %v474_v2 }
 0x1b4   :  { %696 = vadd.xlane.f32.xlu1 %v672_v57 }
 0x1b5   :  { %v416_v15 = vpop.permute.xlu0 %415  ;;  %v456_v9 = vpop.permute.xlu1 %455 }
 0x1b6   :  { %v477_v25 = vsub.f32 %v2481_v6, %v416_v15  ;;  %v485_v14 = vsub.f32 %v2483_v8, %v456_v9 }
 0x1b8   :  { %v1811_v18 = vpop.eup %1810  ;;  %v497_v33 = vmul.f32 1.442695, %v477_v25  ;;  %v513_v13 = vmul.f32 1.442695, %v485_v14 }
 0x1b9   :  { %v1813_v37 = vpop.eup %1812  ;;  %v664_v60 = vsel %vm3142_vm15, %v1811_v18, 0.0 }
 0x1ba   :  { %1814 = vpow2.f32 %v497_v33  ;;  %680 = vadd.xlane.f32.xlu0 %v664_v60  ;;  %v669_v27 = vsel %vm3143_vm10, %v1813_v37, 0.0 }
 0x1bb   :  { %1816 = vpow2.f32 %v513_v13 }
 0x1bc   :  { %690 = vadd.xlane.f32.xlu1 %v669_v27  ;;  %1818 = vpow2.f32 %v491_v49 }
 0x1be   :  { %v466_v25 = vpop.permute.xlu2 %465 }
 0x1bf   :  { %v487_v2 = vsub.f32 %v2531_v29, %v466_v25  ;;  %v3151_v25 = vmov 0.0  }
 0x1c0   :  { %v1815_v6 = vpop.eup %1814  ;;  %v1732_v7 = vsel %vm2545_vm9, 1.0, %v3151_v25 }
 0x1c1   :  { %v1817_v8 = vpop.eup %1816  ;;  %v668_v12 = vsel %vm3144_vm13, %v1815_v6, 0.0 }
 0x1c2   :  { %688 = vadd.xlane.f32.xlu2 %v668_v12  ;;  %v676_v63 = vsel %vm2455_vm0, %v1817_v8, 0.0  ;;  %v1819_v56 = vpop.eup %1818  ;;  %vm3147_vm0 = vnez %v2995_v1 }
 0x1c3   :  { %704 = vadd.xlane.f32.xlu0 %v676_v63  ;;  %v665_v3 = vsel %vm3145_vm2, %v1819_v56, 0.0 }
 0x1ca   :  { %682 = vadd.xlane.f32.xlu2 %v665_v3 }
 0x1cc   :  { %v441_v17 = vpop.permute.xlu1 %440 }
 0x1cd   :  { %v482_v0 = vsub.f32 %v2512_v21, %v441_v17 }
 0x1cf   :  { %v507_v46 = vmul.f32 1.442695, %v482_v0 }
 0x1d1   :  { %1820 = vpow2.f32 %v507_v46 }
 0x1d5   :  { %v461_v57 = vpop.permute.xlu0 %460 }
 0x1d6   :  { %v486_v15 = vsub.f32 %v2510_v20, %v461_v57  ;;  %v517_v20 = vmul.f32 1.442695, %v487_v2  ;;  %v3154_v2 = vsub.f32 %v2693_v34, %v2696_v61 }
 0x1d7   :  { %v1821_v11 = vpop.eup %1820 }
 0x1d8   :  { %v515_v9 = vmul.f32 1.442695, %v486_v15  ;;  %v673_v58 = vsel %vm3146_vm1, %v1821_v11, 0.0  ;;  %v371_v40 = vmul.f32 1.442695, %v3154_v2  ;;  %v3165_v2 = vld [vmem:[#allocation10_spill] sm:$0xff] }
 0x1d9   :  { %698 = vadd.xlane.f32.xlu0 %v673_v58 }
 0x1da   :  { %1822 = vpow2.f32 %v515_v9 }
 0x1dd   :  { %v406_v14 = vpop.permute.xlu0 %405 }
 0x1de   :  { %v475_v5 = vsub.f32 %v2538_v35, %v406_v14  ;;  %v451_v13 = vpop.permute.xlu2 %450  ;;  %v1733_v14 = vsel %vm2626_vm12, 1.0, %v3151_v25 }
 0x1df   :  { %v484_v35 = vsub.f32 %v2613_v59, %v451_v13 }
 0x1e0   :  { %v1823_v18 = vpop.eup %1822  ;;  %v493_v21 = vmul.f32 1.442695, %v475_v5  ;;  %v377_v5 = vmul.f32 1.442695, %v3152_v16 }
 0x1e1   :  { %v677_v33 = vsel %vm3061_vm14, %v1823_v18, 0.0  ;;  %v511_v8 = vmul.f32 1.442695, %v484_v35  ;;  %vm3148_vm14 = vnez %v3016_v23  ;;  %v361_v18 = vmul.f32 1.442695, %v3153_v39 }
 0x1e2   :  { %1824 = vpow2.f32 %v493_v21  ;;  %706 = vadd.xlane.f32.xlu2 %v677_v33  ;;  %v2882_v21 = vld [vmem:[#allocation5] sm:$0xff] }
 0x1e3   :  { %1826 = vpow2.f32 %v517_v20  ;;  %v1326_v20 = vadd.f32 1e-12, %v2882_v21 }
 0x1e4   :  { %v426_v37 = vpop.permute.xlu1 %425 }
 0x1e5   :  { %v446_v41 = vpop.permute.xlu0 %445  ;;  %v479_v60 = vsub.f32 %v2508_v19, %v426_v37  ;;  %vm1347_vm12 = vweird.f32 %v1326_v20 }
 0x1e6   :  { %v483_v27 = vsub.f32 %v2564_v62, %v446_v41  ;;  %v521_v41 = vld [vmem:[#allocation3] sm:$0xff] }
 0x1e7   :  { %v501_v6 = vmul.f32 1.442695, %v479_v60 }
 0x1e8   :  { %v1825_v49 = vpop.eup %1824  ;;  %v509_v29 = vmul.f32 1.442695, %v483_v27 }
 0x1e9   :  { %v666_v38 = vsel %vm3147_vm0, %v1825_v49, 0.0  ;;  %1828 = vpow2.f32 %v501_v6  ;;  %v1827_v56 = vpop.eup %1826  ;;  %v526_v49 = vld [vmem:[#allocation3 + $0x28] sm:$0xff]  ;;  %v363_v6 = vmul.f32 1.442695, %v3158_v47  ;;  %v3176_v47 = vld [vmem:[#allocation17_spill] sm:$0xff] }
 0x1ea   :  { %684 = vadd.xlane.f32.xlu1 %v666_v38  ;;  %1830 = vpow2.f32 %v509_v29  ;;  %v678_v46 = vsel %vm2406_vm7, %v1827_v56, 0.0  ;;  %vm3150_vm7 = vnez %v3021_v30  ;;  %v533_v56 = vld [vmem:[#allocation3 + $0x60] sm:$0xff] }
 0x1eb   :  { %1832 = vpow2.f32 %v511_v8 }
 0x1ec   :  { %v411_v12 = vpop.permute.xlu1 %410 }
 0x1ed   :  { %v431_v63 = vpop.permute.xlu0 %430  ;;  %v476_v19 = vsub.f32 %v2567_v52, %v411_v12  ;;  %v525_v12 = vld [vmem:[#allocation3 + $0x20] sm:$0xff] }
 0x1ee   :  { %v480_v62 = vsub.f32 %v2584_v26, %v431_v63 }
 0x1ef   :  { %v1829_v3 = vpop.eup %1828  ;;  %v495_v17 = vmul.f32 1.442695, %v476_v19 }
 0x1f0   :  { %v503_v59 = vmul.f32 1.442695, %v480_v62  ;;  %v1831_v0 = vpop.eup %1830  ;;  %v670_v1 = vsel %vm3148_vm14, %v1829_v3, 0.0 }
 0x1f1   :  { %1834 = vpow2.f32 %v495_v17  ;;  %692 = vadd.xlane.f32.xlu0 %v670_v1  ;;  %v674_v57 = vsel %vm2436_vm11, %v1831_v0, 0.0  ;;  %v1833_v52 = vpop.eup %1832 }
 0x1f2   :  { %708 = vadd.xlane.f32.xlu1 %v678_v46  ;;  %1836 = vpow2.f32 %v503_v59  ;;  %700 = vadd.xlane.f32.xlu2 %v674_v57  ;;  %v675_v23 = vsel %vm2419_vm3, %v1833_v52, 0.0  ;;  %vm3157_vm3 = vcmask 7168   ;;  %v522_v57 = vld [vmem:[#allocation3 + $0x8] sm:$0xff] }
 0x1f3   :  { %vm3159_vm11 = vmmov %vm3157_vm3 }
 0x1f4   :  { %vm3161_vm9 = vmmov %vm3157_vm3 }
 0x1f5   :  { %vm3164_vm10 = vmmov %vm3157_vm3 }
 0x1f6   :  { %vm3167_vm2 = vmmov %vm3157_vm3 }
 0x1f7   :  { %v1835_v26 = vpop.eup %1834  ;;  %vm3171_vm1 = vmmov %vm3167_vm2 }
 0x1f8   :  { %v1837_v15 = vpop.eup %1836  ;;  %v667_v11 = vsel %vm3149_vm5, %v1835_v26, 0.0  ;;  %vm3181_vm0 = vmmov %vm3171_vm1 }
 0x1f9   :  { %686 = vadd.xlane.f32.xlu0 %v667_v11  ;;  %v671_v44 = vsel %vm3150_vm7, %v1837_v15, 0.0  ;;  %vm3191_vm14 = vmmov %vm3181_vm0 }
 0x1fa   :  { %702 = vadd.xlane.f32.xlu1 %v675_v23  ;;  %694 = vadd.xlane.f32.xlu2 %v671_v44  ;;  %v1353_v23 = vand.u32 2147483648, %v1326_v20  ;;  %vm3192_vm5 = vmmov %vm3181_vm0 }
 0x1fb   :  { %vm3193_vm7 = vmmov %vm3181_vm0 }
 0x1fc   :  { %v471_v53 = vpop.permute.xlu1 %470 }
 0x1fd   :  { %v488_v9 = vsub.f32 %v2622_v36, %v471_v53  ;;  %v1731_v36 = vsel %vm2524_vm8, 1.0, %v3151_v25  ;;  %vm3160_vm8 = vmmov %vm3157_vm3 }
 0x1ff   :  { %v519_v58 = vmul.f32 1.442695, %v488_v9  ;;  %v1351_v9 = vand.u32 2147483647, %v1326_v20 }
 0x201   :  { %1838 = vpow2.f32 %v519_v58  ;;  %v3163_v58 = vsub.f32 %v2705_v24, %v2708_v43  ;;  %vm1352_vm13 = vcmp.eq.f32.partialorder %v1351_v9, 8.507059e+37 }
 0x202   :  { %918 = vadd.xlane.f32.xlu1 %v1733_v14  ;;  %916 = vadd.xlane.f32.xlu2 %v1732_v7  ;;  %1840 = vpow2.f32 %v377_v5  ;;  %v1230_v7 = vld [vmem:[#allocation2] sm:$0xff] }
 0x203   :  { %1842 = vpow2.f32 %v361_v18  ;;  %v379_v25 = vmul.f32 1.442695, %v3163_v58  ;;  %v1566_v5 = vld [vmem:[#allocation4] sm:$0xff]  ;;  %v531_v58 = vld [vmem:[#allocation3 + $0x50] sm:$0xff] }
 0x204   :  { %1844 = vpow2.f32 %v371_v40  ;;  %v3166_v40 = vsub.f32 %v2717_v51, %v3165_v2 }
 0x205   :  { %1846 = vrcp.f32 %v1326_v20 }
 0x206   :  { %1848 = vpow2.f32 %v369_v50  ;;  %v387_v24 = vmul.f32 1.442695, %v3166_v40  ;;  %v524_v40 = vld [vmem:[#allocation3 + $0x18] sm:$0xff] }
 0x207   :  { %v1839_v48 = vpop.eup %1838  ;;  %1850 = vpow2.f32 %v385_v31 }
 0x208   :  { %v679_v30 = vsel %vm3092_vm4, %v1839_v48, 0.0  ;;  %v1841_v33 = vpop.eup %1840  ;;  %1852 = vpow2.f32 %v363_v6  ;;  %vm3162_vm4 = vmmov %vm3157_vm3 }
 0x209   :  { %710 = vadd.xlane.f32.xlu0 %v679_v30  ;;  %v545_v13 = vmul.f32 %v1841_v33, %v529_v28  ;;  %v1843_v34 = vpop.eup %1842  ;;  %v1354_v30 = vor.u32 1.1754944e-38, %v1353_v23  ;;  %v530_v28 = vld [vmem:[#allocation3 + $0x48] sm:$0xff] }
 0x20a   :  { %v1845_v60 = vpop.eup %1844  ;;  %v537_v27 = vmul.f32 %v1843_v34, %v521_v41  ;;  %v3172_v41 = vld [vmem:[#allocation9_spill] sm:$0xff] }
 0x20b   :  { %v542_v54 = vmul.f32 %v1845_v60, %v526_v49  ;;  %v1847_v45 = vpop.eup %1846  ;;  %v3173_v60 = vld [vmem:[#allocation11_spill] sm:$0xff] }
 0x20c   :  { %v1849_v38 = vpop.eup %1848  ;;  %v1343_v19 = vmul.f32 %v1847_v45, %v1326_v20  ;;  %vm1348_vm6 = vweird.f32 %v1847_v45 }
 0x20d   :  { %v1851_v63 = vpop.eup %1850  ;;  %v541_v62 = vmul.f32 %v1849_v38, %v525_v12  ;;  %vm1349_vm15 = vmor %vm1347_vm12, %vm1348_vm6 }
 0x20e   :  { %v549_v17 = vmul.f32 %v1851_v63, %v533_v56  ;;  %v1344_v55 = vsub.f32 1.0, %v1343_v19  ;;  %v1853_v46 = vpop.eup %1852  ;;  %v523_v63 = vld [vmem:[#allocation3 + $0x10] sm:$0xff]  ;;  %vm3201_vm12 = vmmov %vm3181_vm0 }
 0x20f   :  { %v538_v26 = vmul.f32 %v1853_v46, %v522_v57  ;;  %vm3202_vm6 = vmmov %vm3181_vm0 }
 0x210   :  { %v1345_v52 = vmul.f32 %v1847_v45, %v1344_v55  ;;  %v3185_v55 = vld [vmem:[#allocation22_spill] sm:$0xff] }
 0x211   :  { %914 = vadd.xlane.f32.xlu0 %v1731_v36 }
 0x212   :  { %v1346_v53 = vadd.f32 %v1847_v45, %v1345_v52  ;;  %v3188_v52 = vld [vmem:[#allocation20_spill] sm:$0xff] }
 0x214   :  { %v1350_v36 = vsel %vm1349_vm15, %v1847_v45, %v1346_v53  ;;  %v3178_v45 = vld [vmem:[#allocation15_spill] sm:$0xff]  ;;  %vm3203_vm15 = vmmov %vm3181_vm0 }
 0x215   :  { %v1355_v18 = vsel %vm1352_vm13, %v1354_v30, %v1350_v36  ;;  %v535_v53 = vld [vmem:[#allocation3 + $0x70] sm:$0xff] }
 0x227   :  { %v697_v37 = vpop.xlane.xlu1 %696 }
 0x228   :  { %v720_v61 = vadd.f32 %v697_v37, %v545_v13  ;;  %v3169_v13 = vld [vmem:[#allocation13_spill] sm:$0xff]  ;;  %v534_v37 = vld [vmem:[#allocation3 + $0x68] sm:$0xff] }
 0x22a   :  { %736 = vst.msk [vmem:[#allocation3 + $0x40] sm:$0xff] %vm3157_vm3, %v720_v61  ;;  %vm3194_vm3 = vmmov %vm3181_vm0 }
 0x22d   :  { %v681_v35 = vpop.xlane.xlu0 %680 }
 0x22e   :  { %v712_v4 = vadd.f32 %v681_v35, %v537_v27  ;;  %v3174_v27 = vsub.f32 %v3172_v41, %v3173_v60  ;;  %v855_v41 = vld [vmem:[#allocation5 + $0x78] sm:$0xff]  ;;  %v854_v60 = vld [vmem:[#allocation5 + $0x70] sm:$0xff] }
 0x22f   :  { %v691_v29 = vpop.xlane.xlu1 %690 }
 0x230   :  { %728 = vst.msk [vmem:[#allocation3] sm:$0xff] %vm3159_vm11, %v712_v4  ;;  %v717_v8 = vadd.f32 %v691_v29, %v542_v54  ;;  %v389_v49 = vmul.f32 1.442695, %v3174_v27  ;;  %v3175_v4 = vld [vmem:[#allocation14_spill] sm:$0xff]  ;;  %vm3197_vm11 = vmmov %vm3181_vm0 }
 0x231   :  { %v3177_v6 = vsub.f32 %v3175_v4, %v3176_v47  ;;  %v3179_v29 = vld [vmem:[#allocation18_spill] sm:$0xff] }
 0x232   :  { %733 = vst.msk [vmem:[#allocation3 + $0x28] sm:$0xff] %vm3160_vm8, %v717_v8  ;;  %v3180_v38 = vsub.f32 %v3178_v45, %v3179_v29  ;;  %vm3198_vm8 = vmmov %vm3181_vm0  ;;  %v853_v29 = vld [vmem:[#allocation5 + $0x68] sm:$0xff] }
 0x233   :  { %v373_v54 = vmul.f32 1.442695, %v3177_v6 }
 0x234   :  { %v381_v8 = vmul.f32 1.442695, %v3180_v38 }
 0x235   :  { %v689_v3 = vpop.xlane.xlu2 %688 }
 0x236   :  { %v716_v59 = vadd.f32 %v689_v3, %v541_v62  ;;  %v705_v10 = vpop.xlane.xlu0 %704  ;;  %v3182_v62 = vld [vmem:[#allocation16_spill] sm:$0xff]  ;;  %v3183_v3 = vld [vmem:[#allocation19_spill] sm:$0xff] }
 0x237   :  { %v1246_v0 = vld [vmem:[#allocation3] sm:$0xff]  ;;  %v724_v1 = vadd.f32 %v705_v10, %v549_v17  ;;  %v3184_v17 = vsub.f32 %v3182_v62, %v3183_v3 }
 0x238   :  { %1854 = vlog2.f32 %v1246_v0  ;;  %732 = vst.msk [vmem:[#allocation3 + $0x20] sm:$0xff] %vm3161_vm9, %v716_v59  ;;  %v3186_v0 = vld [vmem:[#allocation23_spill] sm:$0xff]  ;;  %vm3199_vm9 = vmmov %vm3181_vm0 }
 0x239   :  { %740 = vst.msk [vmem:[#allocation3 + $0x60] sm:$0xff] %vm3162_vm4, %v724_v1  ;;  %1856 = vpow2.f32 %v379_v25  ;;  %v367_v59 = vmul.f32 1.442695, %v3184_v17  ;;  %v3187_v1 = vsub.f32 %v3185_v55, %v3186_v0  ;;  %vm3200_vm4 = vmmov %vm3181_vm0 }
 0x23a   :  { %1858 = vpow2.f32 %v387_v24  ;;  %v532_v24 = vld [vmem:[#allocation3 + $0x58] sm:$0xff] }
 0x23b   :  { %v383_v46 = vmul.f32 1.442695, %v3187_v1 }
 0x23d   :  { %v683_v15 = vpop.xlane.xlu2 %682 }
 0x23e   :  { %v1855_v11 = vpop.eup %1854  ;;  %v713_v44 = vadd.f32 %v683_v15, %v538_v26  ;;  %v3189_v26 = vld [vmem:[#allocation21_spill] sm:$0xff] }
 0x23f   :  { %v1263_v14 = vmul.f32 0.6931472, %v1855_v11  ;;  %v1857_v33 = vpop.eup %1856  ;;  %v3190_v15 = vsub.f32 %v3188_v52, %v3189_v26 }
 0x240   :  { %729 = vst.msk [vmem:[#allocation3 + $0x8] sm:$0xff] %vm3164_vm10, %v713_v44  ;;  %v546_v20 = vmul.f32 %v1857_v33, %v530_v28  ;;  %v1859_v51 = vpop.eup %1858  ;;  %v527_v44 = vld [vmem:[#allocation3 + $0x30] sm:$0xff]  ;;  %v528_v33 = vld [vmem:[#allocation3 + $0x38] sm:$0xff] }
 0x241   :  { %v1294_v48 = vadd.f32 %v1263_v14, %v1230_v7  ;;  %v550_v34 = vmul.f32 %v1859_v51, %v534_v37  ;;  %v375_v11 = vmul.f32 1.442695, %v3190_v15  ;;  %v3195_v51 = vld [vmem:[#allocation24_spill] sm:$0xff] }
 0x242   :  { %v3196_v37 = vsub.f32 %v3195_v51, %v2807_v22  ;;  %v536_v22 = vld [vmem:[#allocation3 + $0x78] sm:$0xff] }
 0x243   :  { %v1582_v16 = vmul.f32 %v2882_v21, %v1294_v48  ;;  %v3168_v21 = vld [vmem:[#allocation12_spill] sm:$0xff] }
 0x244   :  { %v3170_v32 = vsub.f32 %v3168_v21, %v3169_v13 }
 0x245   :  { %v1598_v39 = vsub.f32 %v1566_v5, %v1582_v16 }
 0x246   :  { %v365_v31 = vmul.f32 1.442695, %v3170_v32 }
 0x247   :  { %v1614_v43 = vmul.f32 %v1598_v39, %v1355_v18 }
 0x248   :  { %1860 = vpow2.f32 %v365_v31 }
 0x249   :  { %1697 = vst.msk [vmem:[%s2952_s4] sm:$0xff] %vm3167_vm2, %v1614_v43  ;;  %1862 = vpow2.f32 %v389_v49 }
 0x24a   :  { %1864 = vpow2.f32 %v373_v54 }
 0x24b   :  { %1866 = vpow2.f32 %v381_v8 }
 0x24c   :  { %v699_v42 = vpop.xlane.xlu0 %698  ;;  %1868 = vpow2.f32 %v367_v59 }
 0x24d   :  { %v721_v50 = vadd.f32 %v699_v42, %v546_v20  ;;  %1870 = vpow2.f32 %v383_v46 }
 0x24e   :  { %v1861_v12 = vpop.eup %1860  ;;  %1872 = vpow2.f32 %v375_v11 }
 0x24f   :  { %737 = vst.msk [vmem:[#allocation3 + $0x48] sm:$0xff] %vm3171_vm1, %v721_v50  ;;  %v539_v56 = vmul.f32 %v1861_v12, %v523_v63  ;;  %v1863_v57 = vpop.eup %1862 }
 0x250   :  { %v1865_v23 = vpop.eup %1864  ;;  %v551_v14 = vmul.f32 %v1863_v57, %v535_v53 }
 0x251   :  { %v1867_v9 = vpop.eup %1866  ;;  %v543_v25 = vmul.f32 %v1865_v23, %v527_v44 }
 0x252   :  { %v547_v48 = vmul.f32 %v1867_v9, %v531_v58  ;;  %v1869_v18 = vpop.eup %1868 }
 0x253   :  { %v1871_v2 = vpop.eup %1870  ;;  %v540_v28 = vmul.f32 %v1869_v18, %v524_v40 }
 0x254   :  { %v1873_v43 = vpop.eup %1872  ;;  %v548_v20 = vmul.f32 %v1871_v2, %v532_v24 }
 0x255   :  { %v707_v61 = vpop.xlane.xlu2 %706  ;;  %v544_v50 = vmul.f32 %v1873_v43, %v528_v33 }
 0x256   :  { %v725_v35 = vadd.f32 %v707_v61, %v550_v34  ;;  %v391_v34 = vmul.f32 1.442695, %v3196_v37 }
 0x258   :  { %741 = vst.msk [vmem:[#allocation3 + $0x68] sm:$0xff] %vm3181_vm0, %v725_v35  ;;  %1874 = vpow2.f32 %v391_v34 }
 0x25d   :  { %v685_v19 = vpop.xlane.xlu1 %684 }
 0x25e   :  { %v714_v10 = vadd.f32 %v685_v19, %v539_v56  ;;  %v1875_v47 = vpop.eup %1874 }
 0x25f   :  { %v552_v6 = vmul.f32 %v1875_v47, %v536_v22 }
 0x260   :  { %730 = vst.msk [vmem:[#allocation3 + $0x10] sm:$0xff] %vm3191_vm14, %v714_v10 }
 0x264   :  { %v693_v7 = vpop.xlane.xlu0 %692 }
 0x265   :  { %v709_v30 = vpop.xlane.xlu1 %708  ;;  %v718_v36 = vadd.f32 %v693_v7, %v543_v25  ;;  %v701_v16 = vpop.xlane.xlu2 %700 }
 0x266   :  { %v726_v5 = vadd.f32 %v709_v30, %v551_v14  ;;  %v722_v39 = vadd.f32 %v701_v16, %v547_v48 }
 0x267   :  { %734 = vst.msk [vmem:[#allocation3 + $0x30] sm:$0xff] %vm3192_vm5, %v718_v36 }
 0x268   :  { %738 = vst.msk [vmem:[#allocation3 + $0x50] sm:$0xff] %vm3193_vm7, %v722_v39 }
 0x269   :  { %742 = vst.msk [vmem:[#allocation3 + $0x70] sm:$0xff] %vm3194_vm3, %v726_v5 }
 0x26c   :  { %v687_v42 = vpop.xlane.xlu0 %686 }
 0x26d   :  { %v703_v21 = vpop.xlane.xlu1 %702  ;;  %v715_v13 = vadd.f32 %v687_v42, %v540_v28  ;;  %v695_v32 = vpop.xlane.xlu2 %694 }
 0x26e   :  { %v723_v31 = vadd.f32 %v703_v21, %v548_v20  ;;  %v719_v61 = vadd.f32 %v695_v32, %v544_v50 }
 0x26f   :  { %731 = vst.msk [vmem:[#allocation3 + $0x18] sm:$0xff] %vm3197_vm11, %v715_v13 }
 0x270   :  { %735 = vst.msk [vmem:[#allocation3 + $0x38] sm:$0xff] %vm3198_vm8, %v719_v61 }
 0x271   :  { %739 = vst.msk [vmem:[#allocation3 + $0x58] sm:$0xff] %vm3199_vm9, %v723_v31 }
 0x275   :  { %v919_v27 = vpop.xlane.xlu1 %918  ;;  %v917_v49 = vpop.xlane.xlu2 %916 }
 0x276   :  { %v935_v35 = vadd.f32 %v919_v27, %v855_v41  ;;  %v934_v4 = vadd.f32 %v917_v49, %v854_v60 }
 0x278   :  { %951 = vst.msk [vmem:[#allocation5 + $0x78] sm:$0xff] %vm3200_vm4, %v935_v35 }
 0x279   :  { %950 = vst.msk [vmem:[#allocation5 + $0x70] sm:$0xff] %vm3201_vm12, %v934_v4 }
 0x27c   :  { %v711_v54 = vpop.xlane.xlu0 %710 }
 0x27d   :  { %v727_v45 = vadd.f32 %v711_v54, %v552_v6 }
 0x27f   :  { %743 = vst.msk [vmem:[#allocation3 + $0x78] sm:$0xff] %vm3202_vm6, %v727_v45 }
 0x284   :  { %v915_v38 = vpop.xlane.xlu0 %914 }
 0x285   :  { %v933_v8 = vadd.f32 %v915_v38, %v853_v29 }
 0x287   :  { %949 = vst.msk [vmem:[#allocation5 + $0x68] sm:$0xff] %vm3203_vm15, %v933_v8 }
 0x288   :  { %1717 = vsyncpa [#allocation7], 1 }

</bundles_post_ra>
